<compile_context>
chip_gen: v5e
topology: v5e:2x2
jax: 0.10.0
libtpu: 0.0.40
codegen_flags: <defaults>
</compile_context>

<pallas_src>
import functools
import math

import jax
import jax.numpy as jnp
from jax.experimental import pallas as pl
from jax.experimental.pallas import tpu as pltpu


def _baas_attention_kernel(hs_ref, ps_ref, wq_ref, wkv_ref, wd_ref, params_ref,
                           o_ref, ext_ref, *, num_heads, prefix_len, suffix_len,
                           input_len, ln_eps, attn_dtype):
    """One block of Bb batch elements per grid step.

    hs_ref:     [Bb, S, H]     query-side hidden states (residual source)
    ps_ref:     [P+Sfx, H]     prefix rows | suffix rows (batch-invariant)
    wq_ref:     [H, H]         Wq with 1/sqrt(d) folded in (torch [out, in] layout)
    wkv_ref:    [2H, H]        Wk | Wv fused along the out axis
    wd_ref:     [H, H]         Wd
    params_ref: [8, H]  f32    rows: bq(scaled), bk, bv, bd, gamma, beta, 0, 0
    o_ref:      [Bb, S, H]
    ext_ref:    [Skv, H]       VMEM scratch: spliced KV source slab
    """
    Bb, S, H = hs_ref.shape
    d = H // num_heads
    P, Sfx, IL = prefix_len, suffix_len, input_len

    hs = hs_ref[...]                              # native dtype; no upcast before MXU
    hs_flat = hs.reshape(Bb * S, H)

    bq = params_ref[0:1, :]
    bk = params_ref[1:2, :]
    bv = params_ref[2:3, :]
    bd = params_ref[3:4, :]
    gamma = params_ref[4:5, :]
    beta = params_ref[5:6, :]

    def proj(x, w_ref):
        # torch Linear: y = x @ W^T with W = [out, in] -> contract dim 1 with dim 1.
        return jax.lax.dot_general(x, w_ref[...], (((1,), (1,)), ((), ())),
                                   preferred_element_type=jnp.float32)

    # Q projection for the whole block in one MXU pass (scale already folded into Wq/bq).
    q_all = (proj(hs_flat, wq_ref) + bq).astype(attn_dtype)          # [Bb*S, H]

    # Splice the KV slab in VMEM: batch-invariant prefix/suffix rows written once per step.
    ext_ref[0:P, :] = ps_ref[0:P, :]
    ext_ref[P + IL:P + IL + Sfx, :] = ps_ref[P:P + Sfx, :]

    ctx_rows = []
    for b in range(Bb):                            # Bb is small by construction
        if IL > 0:
            ext_ref[P:P + IL, :] = hs[b, :IL, :]
        # Fused K|V projection: one MXU pass over the ext slab, N = 2H lanes.
        kv = proj(ext_ref[...], wkv_ref)                              # [Skv, 2H] f32
        k_b = (kv[:, :H] + bk).astype(attn_dtype)
        v_b = (kv[:, H:] + bv).astype(attn_dtype)
        q_b = q_all[b * S:(b + 1) * S, :]

        # Per-head attention. Head slices are lane-aligned when d is a multiple of 128.
        head_ctx = []
        for h in range(num_heads):
            sl = slice(h * d, (h + 1) * d)
            s = jax.lax.dot_general(q_b[:, sl], k_b[:, sl],
                                    (((1,), (1,)), ((), ())),
                                    preferred_element_type=jnp.float32)   # [S, Skv]
            m = jnp.max(s, axis=-1, keepdims=True)
            e = jnp.exp(s - m)
            inv = pl.reciprocal(jnp.sum(e, axis=-1, keepdims=True), approx=False)
            p = (e * inv).astype(attn_dtype)
            head_ctx.append(jnp.dot(p, v_b[:, sl],
                                    preferred_element_type=jnp.float32))  # [S, d]
        ctx_rows.append(head_ctx[0] if num_heads == 1
                        else jnp.concatenate(head_ctx, axis=-1))          # [S, H]

    ctx = ctx_rows[0] if Bb == 1 else jnp.concatenate(ctx_rows, axis=0)   # [Bb*S, H] f32

    # Dense projection + residual + LayerNorm over the whole block (f32 math).
    out = proj(ctx.astype(attn_dtype), wd_ref)
    out = out + bd + hs_flat.astype(jnp.float32)
    mean = jnp.mean(out, axis=-1, keepdims=True)
    cent = out - mean
    var = jnp.mean(cent * cent, axis=-1, keepdims=True)
    norm = cent * jax.lax.rsqrt(var + ln_eps)
    res = norm * gamma + beta
    o_ref[...] = res.reshape(Bb, S, H).astype(o_ref.dtype)


def _pick_batch_block(B, S, target_rows=256):
    """Largest Bb dividing B with Bb*S <= target_rows, keeping >= 2 grid steps when
    B >= 2 so both v7x TensorCores receive work ("parallel" batch axis)."""
    best = 1
    for bb in range(1, B + 1):
        if B % bb:
            continue
        if bb > 1 and bb * S > target_rows:
            continue
        if B >= 2 and B // bb < 2:
            continue
        best = bb
    return best


def baas_attention_forward(hidden_states, prefix_embeddings, suffix_embeddings,
                           wq, bq, wk, bk, wv, bv, wd, bd, ln_gamma, ln_beta,
                           *, num_heads, max_length, is_prefix=False, ln_eps=1e-12,
                           batch_block=None):
    """hidden_states: [B, S, H]; prefix/suffix embeddings: [P, H] / [Sfx, H] (a leading
    unit batch dim is squeezed); all weights in torch Linear layout [out, in];
    biases / LN params: [H]."""
    # TODO(synk): attention_mask / head_mask paths, output_attentions and training-mode
    # dropout are not implemented in the kernel (eval-mode defaults of the module).
    B, S, H = hidden_states.shape
    assert H % num_heads == 0
    d = H // num_heads
    dtype = hidden_states.dtype
    # When the model dtype is bf16, attention-dot operands stay bf16 (f32 accumulation);
    # otherwise f32 operands keep the demo check exact.
    attn_dtype = jnp.bfloat16 if dtype == jnp.bfloat16 else jnp.float32

    pref = prefix_embeddings.reshape(-1, H).astype(dtype)   # batch-invariant content
    suff = suffix_embeddings.reshape(-1, H).astype(dtype)
    P, Sfx = pref.shape[0], suff.shape[0]
    IL = S if is_prefix else min(max_length - (P + Sfx), S)
    Skv = P + IL + Sfx

    # --- one-time wrapper-side parameter prep ------------------------------------
    scale = 1.0 / math.sqrt(d)
    wq_s = (wq.astype(jnp.float32) * scale).astype(dtype)      # fold 1/sqrt(d) into Wq
    wkv = jnp.concatenate([wk, wv], axis=0).astype(dtype)       # [2H, H] fused K|V weight
    wd_c = wd.astype(dtype)
    ps = jnp.concatenate([pref, suff], axis=0)                  # [P+Sfx, H]
    zrow = jnp.zeros((H,), jnp.float32)
    params = jnp.stack([bq.astype(jnp.float32) * scale,
                        bk.astype(jnp.float32), bv.astype(jnp.float32),
                        bd.astype(jnp.float32), ln_gamma.astype(jnp.float32),
                        ln_beta.astype(jnp.float32), zrow, zrow],
                       axis=0)                                  # [8, H] packed rows

    # --- grid / tiling ------------------------------------------------------------
    Bb = batch_block if batch_block is not None else _pick_batch_block(B, S)
    assert B % Bb == 0
    grid = (B // Bb,)

    const2d = lambda i: (0, 0)
    in_specs = [
        pl.BlockSpec((Bb, S, H), lambda i: (i, 0, 0)),   # hidden states (queries + residual)
        pl.BlockSpec((P + Sfx, H), const2d),              # prefix | suffix (batch-invariant)
        pl.BlockSpec((H, H), const2d),                    # Wq (scale folded)
        pl.BlockSpec((2 * H, H), const2d),                # Wk | Wv fused
        pl.BlockSpec((H, H), const2d),                    # Wd
        pl.BlockSpec((8, H), const2d),                    # packed bias / LN rows
    ]
    out_specs = pl.BlockSpec((Bb, S, H), lambda i: (i, 0, 0))

    # Working-set-based scoped-VMEM limit (capped inside v7x's 64 MiB physical VMEM).
    itemsize = jnp.dtype(dtype).itemsize
    weights_b = 4 * H * H * itemsize                     # Wq + Wkv(2H) + Wd
    acts_b = 2 * Bb * S * H * itemsize                   # hs block + out block
    consts_b = (P + Sfx) * H * itemsize + 8 * H * 4
    working = 2 * (weights_b + acts_b + consts_b)        # double-buffered pipelines
    working += Skv * H * itemsize + 10 * Bb * S * H * 4  # ext scratch + live f32 temps
    vmem_limit = int(min(max(2 * working, 32 << 20), 54 << 20))

    kernel = functools.partial(_baas_attention_kernel,
                               num_heads=num_heads, prefix_len=P, suffix_len=Sfx,
                               input_len=IL, ln_eps=ln_eps, attn_dtype=attn_dtype)

    return pl.pallas_call(
        kernel,
        out_shape=jax.ShapeDtypeStruct((B, S, H), dtype),
        grid_spec=pltpu.PrefetchScalarGridSpec(
            num_scalar_prefetch=0,
            grid=grid,
            in_specs=in_specs,
            out_specs=out_specs,
            scratch_shapes=[pltpu.VMEM((Skv, H), dtype)],   # spliced KV source slab
        ),
        compiler_params=pltpu.CompilerParams(
            dimension_semantics=("parallel",),              # batch blocks across v7x TCs
            vmem_limit_bytes=vmem_limit,
        ),
    )(hidden_states, ps, wq_s, wkv, wd_c, params)


# ------------------------------ pure-JAX reference ----------------------------------
def _extend_hidden(hidden_states, prefix, suffix, max_length, is_prefix):
    B, S, H = hidden_states.shape
    pref = prefix if prefix.ndim == 3 else prefix[None]
    suff = suffix if suffix.ndim == 3 else suffix[None]
    pref = jnp.broadcast_to(pref, (B,) + pref.shape[1:])
    suff = jnp.broadcast_to(suff, (B,) + suff.shape[1:])
    trunc = hidden_states
    if not is_prefix:
        input_length = max_length - (pref.shape[1] + suff.shape[1])
        trunc = hidden_states[:, :input_length, :]
    return jnp.concatenate([pref, trunc, suff], axis=1)


def _reference(hidden_states, prefix, suffix, wq, bq, wk, bk, wv, bv, wd, bd,
               gamma, beta, *, num_heads, max_length, is_prefix, ln_eps):
    B, S, H = hidden_states.shape
    d = H // num_heads
    ext = _extend_hidden(hidden_states, prefix, suffix, max_length, is_prefix)
    Skv = ext.shape[1]
    lin = lambda x, w, b: x @ w.T + b
    q = lin(hidden_states, wq, bq).reshape(B, S, num_heads, d).transpose(0, 2, 1, 3)
    k = lin(ext, wk, bk).reshape(B, Skv, num_heads, d).transpose(0, 2, 1, 3)
    v = lin(ext, wv, bv).reshape(B, Skv, num_heads, d).transpose(0, 2, 1, 3)
    s = jnp.einsum('bhqd,bhkd->bhqk', q, k) / math.sqrt(d)
    p = jax.nn.softmax(s, axis=-1)
    ctx = jnp.einsum('bhqk,bhkd->bhqd', p, v).transpose(0, 2, 1, 3).reshape(B, S, H)
    out = lin(ctx, wd, bd) + hidden_states
    mean = out.mean(-1, keepdims=True)
    var = ((out - mean) ** 2).mean(-1, keepdims=True)
    return ((out - mean) / jnp.sqrt(var + ln_eps)) * gamma + beta


if __name__ == "__main__":
    # Small, aligned demo shapes: head_dim = 128 (lane-aligned), H = 256, kv length 16.
    batch, hidden, num_heads = 2, 256, 2
    prefix_len, suffix_len = 4, 4
    max_length = 16
    input_len = max_length - (prefix_len + suffix_len)    # 8
    seq = input_len                                        # hidden_states length
    ln_eps = 1e-12

    key = jax.random.PRNGKey(0)
    ks = jax.random.split(key, 12)

    hs = jax.random.normal(ks[0], (batch, seq, hidden), dtype=jnp.float32)
    prefix = jax.random.normal(ks[1], (prefix_len, hidden), dtype=jnp.float32)
    suffix = jax.random.normal(ks[2], (suffix_len, hidden), dtype=jnp.float32)

    bound = 1.0 / math.sqrt(hidden)
    def lin_init(kw, kb):
        w = jax.random.uniform(kw, (hidden, hidden), jnp.float32, -bound, bound)
        b = jax.random.uniform(kb, (hidden,), jnp.float32, -bound, bound)
        return w, b

    wq, bq = lin_init(ks[3], ks[4])
    wk, bk = lin_init(ks[5], ks[6])
    wv, bv = lin_init(ks[7], ks[8])
    wd, bd = lin_init(ks[9], ks[10])
    gamma = jnp.ones((hidden,), jnp.float32)
    beta = jnp.zeros((hidden,), jnp.float32)

    out = baas_attention_forward(
        hs, prefix, suffix, wq, bq, wk, bk, wv, bv, wd, bd, gamma, beta,
        num_heads=num_heads, max_length=max_length, is_prefix=False, ln_eps=ln_eps)
    out = jax.block_until_ready(out)

    ref = _reference(hs, prefix, suffix, wq, bq, wk, bk, wv, bv, wd, bd, gamma, beta,
                     num_heads=num_heads, max_length=max_length, is_prefix=False,
                     ln_eps=ln_eps)

    assert out.shape == (batch, seq, hidden)
    assert jnp.allclose(out, ref, atol=1e-4, rtol=1e-4), (
        f"mismatch vs reference, max abs err = {jnp.max(jnp.abs(out - ref))}")

    print("KERNEL_OK")
</pallas_src>

<mosaic_0001>
module attributes {stable_mosaic.version = 11 : i64} {
  func.func @_baas_attention_kernel(%arg0: i32, %arg1: memref<1x8x256xf32, #tpu.memory_space<vmem>>, %arg2: memref<8x256xf32, #tpu.memory_space<vmem>>, %arg3: memref<256x256xf32, #tpu.memory_space<vmem>>, %arg4: memref<512x256xf32, #tpu.memory_space<vmem>>, %arg5: memref<256x256xf32, #tpu.memory_space<vmem>>, %arg6: memref<8x256xf32, #tpu.memory_space<vmem>>, %arg7: memref<1x8x256xf32, #tpu.memory_space<vmem>>, %arg8: memref<16x256xf32, #tpu.memory_space<vmem>>) attributes {dimension_semantics = [#tpu.dimension_semantics<parallel>], iteration_bounds = array<i64: 2>, scalar_prefetch = 0 : i64, scratch_operands = 1 : i64, tpu.core_type = #tpu.core_type<tc>, window_params = [{transform_indices = @transform_0, window_bounds = array<i64: 1, 8, 256>}, {pipeline_mode = #tpu.pipeline_mode<synchronous>, transform_indices = @transform_1, window_bounds = array<i64: 8, 256>}, {pipeline_mode = #tpu.pipeline_mode<synchronous>, transform_indices = @transform_2, window_bounds = array<i64: 256, 256>}, {pipeline_mode = #tpu.pipeline_mode<synchronous>, transform_indices = @transform_3, window_bounds = array<i64: 512, 256>}, {pipeline_mode = #tpu.pipeline_mode<synchronous>, transform_indices = @transform_4, window_bounds = array<i64: 256, 256>}, {pipeline_mode = #tpu.pipeline_mode<synchronous>, transform_indices = @transform_5, window_bounds = array<i64: 8, 256>}, {transform_indices = @transform_6, window_bounds = array<i64: 1, 8, 256>}]} {
    %c0 = arith.constant 0 : index
    %c0_0 = arith.constant 0 : index
    %c0_1 = arith.constant 0 : index
    %0 = vector.load %arg1[%c0, %c0_0, %c0_1] : memref<1x8x256xf32, #tpu.memory_space<vmem>>, vector<1x8x256xf32>
    %1 = vector.shape_cast %0 : vector<1x8x256xf32> to vector<8x256xf32>
    %c0_2 = arith.constant 0 : index
    %c0_3 = arith.constant 0 : index
    %2 = vector.load %arg6[%c0_2, %c0_3] : memref<8x256xf32, #tpu.memory_space<vmem>>, vector<1x256xf32>
    %c1 = arith.constant 1 : index
    %c0_4 = arith.constant 0 : index
    %3 = vector.load %arg6[%c1, %c0_4] : memref<8x256xf32, #tpu.memory_space<vmem>>, vector<1x256xf32>
    %c2 = arith.constant 2 : index
    %c0_5 = arith.constant 0 : index
    %4 = vector.load %arg6[%c2, %c0_5] : memref<8x256xf32, #tpu.memory_space<vmem>>, vector<1x256xf32>
    %c3 = arith.constant 3 : index
    %c0_6 = arith.constant 0 : index
    %5 = vector.load %arg6[%c3, %c0_6] : memref<8x256xf32, #tpu.memory_space<vmem>>, vector<1x256xf32>
    %c4 = arith.constant 4 : index
    %c0_7 = arith.constant 0 : index
    %6 = vector.load %arg6[%c4, %c0_7] : memref<8x256xf32, #tpu.memory_space<vmem>>, vector<1x256xf32>
    %c5 = arith.constant 5 : index
    %c0_8 = arith.constant 0 : index
    %7 = vector.load %arg6[%c5, %c0_8] : memref<8x256xf32, #tpu.memory_space<vmem>>, vector<1x256xf32>
    %c0_9 = arith.constant 0 : index
    %c0_10 = arith.constant 0 : index
    %8 = vector.load %arg3[%c0_9, %c0_10] : memref<256x256xf32, #tpu.memory_space<vmem>>, vector<256x256xf32>
    %cst = arith.constant dense<0.000000e+00> : vector<8x256xf32>
    %9 = tpu.matmul %1, %8, %cst {dimension_numbers = #tpu.dot_dimension_numbers<[1], [1], [0], [0], [0, 0, 1, 0], [], []>} : vector<8x256xf32>, vector<256x256xf32>, vector<8x256xf32> -> vector<8x256xf32>
    %10 = vector.broadcast %2 : vector<1x256xf32> to vector<8x256xf32>
    %11 = arith.addf %9, %10 : vector<8x256xf32>
    %c0_11 = arith.constant 0 : index
    %c0_12 = arith.constant 0 : index
    %12 = vector.load %arg2[%c0_11, %c0_12] : memref<8x256xf32, #tpu.memory_space<vmem>>, vector<4x256xf32>
    %c0_13 = arith.constant 0 : index
    %c0_14 = arith.constant 0 : index
    %13 = vector.load %arg8[%c0_13, %c0_14] : memref<16x256xf32, #tpu.memory_space<vmem>>, vector<4x256xf32>
    tpu.vector_store %arg8[%c0_13, %c0_14], %12 {strides = array<i32>} : memref<16x256xf32, #tpu.memory_space<vmem>>, vector<4x256xf32>,
    %c4_15 = arith.constant 4 : index
    %c0_16 = arith.constant 0 : index
    %14 = vector.load %arg2[%c4_15, %c0_16] : memref<8x256xf32, #tpu.memory_space<vmem>>, vector<4x256xf32>
    %c12 = arith.constant 12 : index
    %c0_17 = arith.constant 0 : index
    %15 = vector.load %arg8[%c12, %c0_17] : memref<16x256xf32, #tpu.memory_space<vmem>>, vector<4x256xf32>
    tpu.vector_store %arg8[%c12, %c0_17], %14 {strides = array<i32>} : memref<16x256xf32, #tpu.memory_space<vmem>>, vector<4x256xf32>,
    %16 = vector.shape_cast %0 : vector<1x8x256xf32> to vector<8x256xf32>
    %c4_18 = arith.constant 4 : index
    %c0_19 = arith.constant 0 : index
    %17 = vector.load %arg8[%c4_18, %c0_19] : memref<16x256xf32, #tpu.memory_space<vmem>>, vector<8x256xf32>
    tpu.vector_store %arg8[%c4_18, %c0_19], %16 {strides = array<i32>} : memref<16x256xf32, #tpu.memory_space<vmem>>, vector<8x256xf32>,
    %c0_20 = arith.constant 0 : index
    %c0_21 = arith.constant 0 : index
    %18 = vector.load %arg8[%c0_20, %c0_21] : memref<16x256xf32, #tpu.memory_space<vmem>>, vector<16x256xf32>
    %c0_22 = arith.constant 0 : index
    %c0_23 = arith.constant 0 : index
    %19 = vector.load %arg4[%c0_22, %c0_23] : memref<512x256xf32, #tpu.memory_space<vmem>>, vector<512x256xf32>
    %cst_24 = arith.constant dense<0.000000e+00> : vector<16x512xf32>
    %20 = tpu.matmul %18, %19, %cst_24 {dimension_numbers = #tpu.dot_dimension_numbers<[1], [1], [0], [0], [0, 0, 1, 0], [], []>} : vector<16x256xf32>, vector<512x256xf32>, vector<16x512xf32> -> vector<16x512xf32>
    %21 = vector.extract_strided_slice %20 {offsets = [0, 0], sizes = [16, 256], strides = [1, 1]} : vector<16x512xf32> to vector<16x256xf32>
    %22 = vector.broadcast %3 : vector<1x256xf32> to vector<16x256xf32>
    %23 = arith.addf %21, %22 : vector<16x256xf32>
    %24 = vector.extract_strided_slice %20 {offsets = [0, 256], sizes = [16, 256], strides = [1, 1]} : vector<16x512xf32> to vector<16x256xf32>
    %25 = vector.broadcast %4 : vector<1x256xf32> to vector<16x256xf32>
    %26 = arith.addf %24, %25 : vector<16x256xf32>
    %27 = vector.extract_strided_slice %11 {offsets = [0, 0], sizes = [8, 128], strides = [1, 1]} : vector<8x256xf32> to vector<8x128xf32>
    %28 = vector.extract_strided_slice %23 {offsets = [0, 0], sizes = [16, 128], strides = [1, 1]} : vector<16x256xf32> to vector<16x128xf32>
    %cst_25 = arith.constant dense<0.000000e+00> : vector<8x16xf32>
    %29 = tpu.matmul %27, %28, %cst_25 {dimension_numbers = #tpu.dot_dimension_numbers<[1], [1], [0], [0], [0, 0, 1, 0], [], []>} : vector<8x128xf32>, vector<16x128xf32>, vector<8x16xf32> -> vector<8x16xf32>
    %cst_26 = arith.constant dense<0xFF800000> : vector<8xf32>
    %30 = vector.multi_reduction <maximumf>, %29, %cst_26 [1] : vector<8x16xf32> to vector<8xf32>
    %31 = vector.shape_cast %30 : vector<8xf32> to vector<8x1xf32>
    %32 = vector.broadcast %31 : vector<8x1xf32> to vector<8x16xf32>
    %33 = arith.subf %29, %32 : vector<8x16xf32>
    %34 = math.exp %33 : vector<8x16xf32>
    %cst_27 = arith.constant dense<0.000000e+00> : vector<8xf32>
    %35 = vector.multi_reduction <add>, %34, %cst_27 [1] : vector<8x16xf32> to vector<8xf32>
    %36 = vector.shape_cast %35 : vector<8xf32> to vector<8x1xf32>
    %37 = tpu.reciprocal %36 : vector<8x1xf32> -> vector<8x1xf32>
    %38 = vector.broadcast %37 : vector<8x1xf32> to vector<8x16xf32>
    %39 = arith.mulf %34, %38 : vector<8x16xf32>
    %40 = vector.extract_strided_slice %26 {offsets = [0, 0], sizes = [16, 128], strides = [1, 1]} : vector<16x256xf32> to vector<16x128xf32>
    %cst_28 = arith.constant dense<0.000000e+00> : vector<8x128xf32>
    %41 = tpu.matmul %39, %40, %cst_28 {dimension_numbers = #tpu.dot_dimension_numbers<[1], [0], [0], [1], [0, 0, 1, 1], [], []>} : vector<8x16xf32>, vector<16x128xf32>, vector<8x128xf32> -> vector<8x128xf32>
    %42 = vector.extract_strided_slice %11 {offsets = [0, 128], sizes = [8, 128], strides = [1, 1]} : vector<8x256xf32> to vector<8x128xf32>
    %43 = vector.extract_strided_slice %23 {offsets = [0, 128], sizes = [16, 128], strides = [1, 1]} : vector<16x256xf32> to vector<16x128xf32>
    %cst_29 = arith.constant dense<0.000000e+00> : vector<8x16xf32>
    %44 = tpu.matmul %42, %43, %cst_29 {dimension_numbers = #tpu.dot_dimension_numbers<[1], [1], [0], [0], [0, 0, 1, 0], [], []>} : vector<8x128xf32>, vector<16x128xf32>, vector<8x16xf32> -> vector<8x16xf32>
    %cst_30 = arith.constant dense<0xFF800000> : vector<8xf32>
    %45 = vector.multi_reduction <maximumf>, %44, %cst_30 [1] : vector<8x16xf32> to vector<8xf32>
    %46 = vector.shape_cast %45 : vector<8xf32> to vector<8x1xf32>
    %47 = vector.broadcast %46 : vector<8x1xf32> to vector<8x16xf32>
    %48 = arith.subf %44, %47 : vector<8x16xf32>
    %49 = math.exp %48 : vector<8x16xf32>
    %cst_31 = arith.constant dense<0.000000e+00> : vector<8xf32>
    %50 = vector.multi_reduction <add>, %49, %cst_31 [1] : vector<8x16xf32> to vector<8xf32>
    %51 = vector.shape_cast %50 : vector<8xf32> to vector<8x1xf32>
    %52 = tpu.reciprocal %51 : vector<8x1xf32> -> vector<8x1xf32>
    %53 = vector.broadcast %52 : vector<8x1xf32> to vector<8x16xf32>
    %54 = arith.mulf %49, %53 : vector<8x16xf32>
    %55 = vector.extract_strided_slice %26 {offsets = [0, 128], sizes = [16, 128], strides = [1, 1]} : vector<16x256xf32> to vector<16x128xf32>
    %cst_32 = arith.constant dense<0.000000e+00> : vector<8x128xf32>
    %56 = tpu.matmul %54, %55, %cst_32 {dimension_numbers = #tpu.dot_dimension_numbers<[1], [0], [0], [1], [0, 0, 1, 1], [], []>} : vector<8x16xf32>, vector<16x128xf32>, vector<8x128xf32> -> vector<8x128xf32>
    %57 = tpu.concatenate %41, %56 in 1 : vector<8x128xf32>, vector<8x128xf32> -> vector<8x256xf32>
    %c0_33 = arith.constant 0 : index
    %c0_34 = arith.constant 0 : index
    %58 = vector.load %arg5[%c0_33, %c0_34] : memref<256x256xf32, #tpu.memory_space<vmem>>, vector<256x256xf32>
    %cst_35 = arith.constant dense<0.000000e+00> : vector<8x256xf32>
    %59 = tpu.matmul %57, %58, %cst_35 {dimension_numbers = #tpu.dot_dimension_numbers<[1], [1], [0], [0], [0, 0, 1, 0], [], []>} : vector<8x256xf32>, vector<256x256xf32>, vector<8x256xf32> -> vector<8x256xf32>
    %60 = vector.broadcast %5 : vector<1x256xf32> to vector<8x256xf32>
    %61 = arith.addf %59, %60 : vector<8x256xf32>
    %62 = arith.addf %61, %1 : vector<8x256xf32>
    %cst_36 = arith.constant dense<0.000000e+00> : vector<8xf32>
    %63 = vector.multi_reduction <add>, %62, %cst_36 [1] : vector<8x256xf32> to vector<8xf32>
    %64 = vector.shape_cast %63 : vector<8xf32> to vector<8x1xf32>
    %cst_37 = arith.constant 2.560000e+02 : f32
    %65 = vector.broadcast %cst_37 : f32 to vector<8x1xf32>
    %66 = arith.divf %64, %65 : vector<8x1xf32>
    %67 = vector.broadcast %66 : vector<8x1xf32> to vector<8x256xf32>
    %68 = arith.subf %62, %67 : vector<8x256xf32>
    %69 = arith.mulf %68, %68 : vector<8x256xf32>
    %cst_38 = arith.constant dense<0.000000e+00> : vector<8xf32>
    %70 = vector.multi_reduction <add>, %69, %cst_38 [1] : vector<8x256xf32> to vector<8xf32>
    %71 = vector.shape_cast %70 : vector<8xf32> to vector<8x1xf32>
    %cst_39 = arith.constant 2.560000e+02 : f32
    %72 = vector.broadcast %cst_39 : f32 to vector<8x1xf32>
    %73 = arith.divf %71, %72 : vector<8x1xf32>
    %cst_40 = arith.constant 9.99999996E-13 : f32
    %74 = vector.broadcast %cst_40 : f32 to vector<8x1xf32>
    %75 = arith.addf %73, %74 : vector<8x1xf32>
    %76 = math.rsqrt %75 : vector<8x1xf32>
    %77 = vector.broadcast %76 : vector<8x1xf32> to vector<8x256xf32>
    %78 = arith.mulf %68, %77 : vector<8x256xf32>
    %79 = vector.broadcast %6 : vector<1x256xf32> to vector<8x256xf32>
    %80 = arith.mulf %78, %79 : vector<8x256xf32>
    %81 = vector.broadcast %7 : vector<1x256xf32> to vector<8x256xf32>
    %82 = arith.addf %80, %81 : vector<8x256xf32>
    %83 = vector.shape_cast %82 : vector<8x256xf32> to vector<1x8x256xf32>
    %c0_41 = arith.constant 0 : index
    %c0_42 = arith.constant 0 : index
    %c0_43 = arith.constant 0 : index
    %84 = vector.load %arg7[%c0_41, %c0_42, %c0_43] : memref<1x8x256xf32, #tpu.memory_space<vmem>>, vector<1x8x256xf32>
    tpu.vector_store %arg7[%c0_41, %c0_42, %c0_43], %83 {strides = array<i32>} : memref<1x8x256xf32, #tpu.memory_space<vmem>>, vector<1x8x256xf32>,
    return
  }
  func.func @transform_0(%arg0: i32) -> (i32, i32, i32) {
    %c0_i32 = arith.constant 0 : i32
    %c0_i32_0 = arith.constant 0 : i32
    %c0_i32_1 = arith.constant 0 : i32
    return %arg0, %c0_i32, %c0_i32_0 : i32, i32, i32
  }
  func.func @transform_1(%arg0: i32) -> (i32, i32) {
    %c0_i32 = arith.constant 0 : i32
    %c0_i32_0 = arith.constant 0 : i32
    %c0_i32_1 = arith.constant 0 : i32
    return %c0_i32, %c0_i32_0 : i32, i32
  }
  func.func @transform_2(%arg0: i32) -> (i32, i32) {
    %c0_i32 = arith.constant 0 : i32
    %c0_i32_0 = arith.constant 0 : i32
    %c0_i32_1 = arith.constant 0 : i32
    return %c0_i32, %c0_i32_0 : i32, i32
  }
  func.func @transform_3(%arg0: i32) -> (i32, i32) {
    %c0_i32 = arith.constant 0 : i32
    %c0_i32_0 = arith.constant 0 : i32
    %c0_i32_1 = arith.constant 0 : i32
    return %c0_i32, %c0_i32_0 : i32, i32
  }
  func.func @transform_4(%arg0: i32) -> (i32, i32) {
    %c0_i32 = arith.constant 0 : i32
    %c0_i32_0 = arith.constant 0 : i32
    %c0_i32_1 = arith.constant 0 : i32
    return %c0_i32, %c0_i32_0 : i32, i32
  }
  func.func @transform_5(%arg0: i32) -> (i32, i32) {
    %c0_i32 = arith.constant 0 : i32
    %c0_i32_0 = arith.constant 0 : i32
    %c0_i32_1 = arith.constant 0 : i32
    return %c0_i32, %c0_i32_0 : i32, i32
  }
  func.func @transform_6(%arg0: i32) -> (i32, i32, i32) {
    %c0_i32 = arith.constant 0 : i32
    %c0_i32_0 = arith.constant 0 : i32
    %c0_i32_1 = arith.constant 0 : i32
    return %arg0, %c0_i32, %c0_i32_0 : i32, i32, i32
  }
}

</mosaic_0001>

<bundles_post_ra>
// kernel: tpu_custom_call.1
= control target key start
LH: loop header
LB: loop body
LE: loop exit
PB: predicated region body
PF: predicated region fallthrough
CT: control target
= control target key end

     0   :  { %11 = vsyncpa [#allocation4], 0  ;;  %s2003_s0 = inlined_call_operand.hbm [shape: f32[2,8,256], index: 0, kind: input, shape index: {}]   ;;  %s2004_s1 = inlined_call_operand.hbm [shape: f32[8,256], index: 1, kind: input, shape index: {}]   ;;  %s2005_s2 = inlined_call_operand.hbm [shape: f32[256,256], index: 2, kind: input, shape index: {}]   ;;  %s2006_s3 = inlined_call_operand.hbm [shape: f32[512,256], index: 3, kind: input, shape index: {}]   ;;  %s2007_s4 = inlined_call_operand.hbm [shape: f32[256,256], index: 4, kind: input, shape index: {}]   ;;  %s2008_s5 = inlined_call_operand.hbm [shape: f32[8,256], index: 5, kind: input, shape index: {}]   ;;  %s2009_s6 = inlined_call_operand.hbm [shape: f32[2,8,256], index: 6, kind: output, shape index: {}]  }
   0x1   :  { %13 = vsyncpa [#allocation4 + $0x1], 0 }
   0x2   :  { %14 = vsyncpa [#allocation7], 0 }
   0x3   :  { %15 = vsyncpa [#allocation10], 0 }
   0x4   :  { %16 = vsyncpa [#allocation13], 0 }
   0x5   :  { %17 = vsyncpa [#allocation5], 0 }
   0x6   :  { %19 = vsyncpa [#allocation5 + $0x1], 0  ;;  %s1775_s21 = smov 0   ;;  %s1777_s22 = smov 0  }
   0x7   :  { %s1779_s23 = smov 0   ;;  %s1781_s24 = smov 0  }
   0x8 LB: > { %s199_s27 = sshll.u32 %s2004_s1, 4  ;;  %s1799_s28 = sadd.s32 4294967295, %s1730_s24   ;;  %s1730_s24 = sphi %s1781_s24, %s2020_s24   ;;  %s1726_s23 = sphi %s1779_s23, %s2019_s23   ;;  %s1722_s22 = sphi %s1777_s22, %s2018_s22   ;;  %s1718_s21 = sphi %s1775_s21, %s2017_s21   ;;  %s200_s27 = int_to_ptr.hbm [resolvable:$true] %s199_s27 }
   0x9   : > { %p1333_p0 = scmp.ge.s32.totalorder %s1730_s24, 1  ;;  %p46_p1 = scmp.eq.s32.totalorder %s1799_s28, 0 }
   0xa   : > { %p187_p2 = scmp.lt.s32.totalorder %s1730_s24, 3  ;;  %s1732_s30 = smov [#allocation6]  }
   0xb   : > { %s201_s7 = sshll.u32 %s1732_s30, 4  ;;  %s224_s10 = sshll.u32 %s2006_s3, 4  ;;  %s202_s7 = int_to_ptr.vmem [resolvable:$true] %s201_s7  ;;  %s225_s10 = int_to_ptr.hbm [resolvable:$true] %s224_s10 }
   0xc   : > { %p1804_p3 = pnand %p1333_p0, %p187_p2  ;;  %s210_s14 = sshll.u32 %s2005_s2, 4  ;;  %s211_s14 = int_to_ptr.hbm [resolvable:$true] %s210_s14 }
   0xd   : > { %s1733_s15 = smov [#allocation9]   ;;  %s1734_s17 = smov 256  }
   0xe   : > { %p1384_p5 = pneg %p1804_p3  ;;  %s226_s16 = sshll.u32 %s1733_s15, 4  ;;  %s227_s16 = int_to_ptr.vmem [resolvable:$true] %s226_s16 }
   0xf   : > { %s1735_s18 = smov 16   ;;  %s238_s25 = sshll.u32 %s2007_s4, 4  ;;  %s239_s25 = int_to_ptr.hbm [resolvable:$true] %s238_s25 }
  0x10   : > { %p1816_p6 = pnand %p1384_p5, %p46_p1  ;;  %s1736_s26 = smov [#allocation8]  }
  0x11   : > { %s212_s30 = sshll.u32 %s1736_s26, 4  ;;  %s1738_s12 = smov [#allocation12]   ;;  %s213_s30 = int_to_ptr.vmem [resolvable:$true] %s212_s30 }
  0x12   : > { %1387 = dma.hbm_to_vmem [thread:$0]  (!%p1816_p6), %s200_s27, 256, %s202_s7, [#allocation7]  }
  0x13   : > { %1393 = dma.hbm_to_vmem [thread:$0]  (!%p1816_p6), %s225_s10, 16384, %s227_s16, [#allocation10], %s1734_s17, %s1734_s17, %s1735_s18  }
  0x14   : > { %1390 = dma.hbm_to_vmem [thread:$0]  (!%p1816_p6), %s211_s14, 8192, %s213_s30, [#allocation7], %s1734_s17, %s1734_s17, %s1735_s18  }
  0x15   : > { %s1737_s27 = smov [#allocation11]   ;;  %s253_s10 = sshll.u32 %s2008_s5, 4  ;;  %s254_s10 = int_to_ptr.hbm [resolvable:$true] %s253_s10 }
  0x16   : > { %s240_s7 = sshll.u32 %s1737_s27, 4  ;;  %s255_s13 = sshll.u32 %s1738_s12, 4  ;;  %s241_s7 = int_to_ptr.vmem [resolvable:$true] %s240_s7  ;;  %s256_s13 = int_to_ptr.vmem [resolvable:$true] %s255_s13 }
  0x17   : > { %1396 = dma.hbm_to_vmem [thread:$0]  (!%p1816_p6), %s239_s25, 8192, %s241_s7, [#allocation10], %s1734_s17, %s1734_s17, %s1735_s18  }
  0x18   : > { %1399 = dma.hbm_to_vmem [thread:$0]  (!%p1816_p6), %s254_s10, 256, %s256_s13, [#allocation13]  }
  0x19   : > { %s1332_s14 = sadd.s32 4294967294, %s1730_s24   ;;  %s1841_s15 = sadd.s32 1, %s1730_s24  }
  0x1a   : > { %s32_s16 = sadd.s32 1, %s1726_s23  ;;  %s29_s19 = ssub.s32 %s1730_s24, %s1841_s15 }
  0x1b   : > { %p39_p7 = scmp.ne.s32.totalorder %s1726_s23, %s1722_s22  ;;  %p30_p8 = scmp.eq.s32.totalorder %s29_s19, 0 }
  0x1c   : > { %p40_p9 = scmp.eq.s32.totalorder %s1730_s24, 0  ;;  %p45_p10 = scmp.ne.s32.totalorder %s1722_s22, %s1718_s21 }
  0x1d   : > { %p174_p11 = scmp.eq.s32.totalorder %s1799_s28, 1  ;;  %p180_p0 = scmp.eq.s32.totalorder %s1332_s14, 1 }
  0x1e   : > { %s1853_s17 = scalar_select %p30_p8, %s1726_s23, %s32_s16  }
  0x1f   : > { %p1857_p12 = por %p46_p1, %p45_p10  ;;  %p1861_p13 = por %p174_p11, %p39_p7 }
  0x20   : > { %p41_p2 = por %p40_p9, %p39_p7  ;;  %s266_s20 = sand.u32 1, %s1726_s23  }
  0x21   : > { %p1866_p5 = por %p180_p0, %p45_p10  ;;  %p1413_p6 = scmp.lt.s32.totalorder %s1730_s24, 2 }
  0x22   : > { %s1340_s26 = sshll.u32 %s266_s20, 4  ;;  %s1358_s30 = sshll.u32 %s1730_s24, 4 }
  0x23   : > { %s275_s8 = scalar_lea.hbm %s2003_s0, %s1358_s30  ;;  %s270_s10 = scalar_lea.vmem [#allocation3], %s1340_s26 }
  0x24   : > { %s277_s9 = sshll.u32 %s275_s8, 4  ;;  %s279_s12 = sshll.u32 %s270_s10, 4  ;;  %s278_s9 = int_to_ptr.hbm [resolvable:$true] %s277_s9  ;;  %s280_s12 = int_to_ptr.vmem [resolvable:$true] %s279_s12 }
  0x25   : > { %p1875_p8 = pnand %p1413_p6, %p41_p2  ;;  %s267_s14 = scalar_lea.sflag [#allocation4], %s266_s20 }
  0x26   : > { %s1622_s16 = sshra.s32 %s278_s9, 4  ;;  %s1629_s26 = scalar_lea.hbm %s2003_s0, 32  ;;  %s1623_s16 = int_to_ptr.hbm [resolvable:$true] %s1622_s16 }
  0x27   : > { %s1624_s19 = scalar_lea.hbm %s1623_s16, 16  ;;  %p1626_p9 = pneg %p1875_p8 }
  0x28   : > { %p1625_p7 = scmp.ne.s32.totalorder %s1623_s16, %s1624_s19  ;;  %p1630_p0 = scmp.lt.s32.totalorder %s1623_s16, %s2003_s0 }
  0x29   : > { %p1631_p2 = scmp.lt.s32.totalorder %s1629_s26, %s1624_s19 }
  0x2a   : > { %p1627_p10 = pnand %p1626_p9, %p1625_p7 }
  0x2b   : > { %p1632_p6 = por %p1631_p2, %p1630_p0 }
  0x2c   : > { %p1628_p11 = pneg %p1627_p10 }
  0x2e   : > { %p1633_p4 = pnand %p1632_p6, %p1628_p11 }
  0x30   : > { %1636 = shalt.err (!%p1633_p4)
}
  0x31   : > { %1403 = dma.hbm_to_vmem [thread:$0]  (!%p1875_p8), %s278_s9, 256, %s280_s12, %s267_s14  }
  0x32   : > { %288 = sbr.rel (%p1804_p3) target bundleno = 1285 (0x505), region = 44  ;;  %s1892_s20 = sand.u32 (!%p1804_p3), 1, %s1722_s22  }
  0x33   : > { %s1344_s10 = sshll.u32 (!%p1804_p3), %s1892_s20, 4  ;;  %s291_s30 = scalar_lea.sflag (!%p1804_p3), [#allocation4], %s1892_s20 }
  0x34   : > { %s1898_s16 = scalar_lea.vmem (!%p1804_p3), [#allocation3], %s1344_s10 }
  0x37   : > { %1697 = dma.done.wait (%p1857_p12), %s291_s30, 256  }
  0x38   : > { %1699 = vsyncadd (%p1857_p12), %s291_s30, 4294967040 }
  0x39   : > { %1701 = dma.done.wait (%p46_p1), [#allocation7], 8448  }
  0x3a   : > { %1703 = vsyncadd (%p46_p1), [#allocation7], 4294958848 }
  0x3b   : > { %1705 = dma.done.wait (%p46_p1), [#allocation10], 24576  }
  0x3c   : > { %1707 = vsyncadd (%p46_p1), [#allocation10], 4294942720 }
  0x3d   : > { %1709 = dma.done.wait (%p46_p1), [#allocation13], 256  }
  0x3e   : > { %1711 = vsyncadd (%p46_p1), [#allocation13], 4294967040  ;;  %v392_v0 = vld [vmem:[#allocation8 + $0xf0] sm:$0xff]  ;;  %v393_v1 = vld [vmem:[#allocation8 + $0xf8] sm:$0xff]  ;;  %vm883_vm0 = vcmask 130048   ;;  %s1359_s29 = sshll.u32 %s1799_s28, 4 }
  0x3f   : > { %v424_v2 = vld [vmem:[#allocation8 + $0x1f0] sm:$0xff]  ;;  %431 = vmatpush.xpose.msra.mxu0 %v392_v0  ;;  %451 = vmatpush.xpose.msra.mxu1 %v393_v1  ;;  %v425_v3 = vld [vmem:[#allocation8 + $0x1f8] sm:$0xff]  ;;  %v390_v4 = vld [vmem:[#allocation8 + $0xe0] sm:$0xff]  ;;  %s1209_s12 = scalar_lea.hbm %s2009_s6, %s1359_s29  ;;  %s348_s28 = scalar_lea.vmem [#allocation14], %s1344_s10 }
  0x40   : > { %471 = vmatpush.xpose.msra.mxu2 %v424_v2  ;;  %491 = vmatpush.xpose.msra.mxu3 %v425_v3  ;;  %v391_v5 = vld [vmem:[#allocation8 + $0xe8] sm:$0xff]  ;;  %v422_v6 = vld [vmem:[#allocation8 + $0x1e0] sm:$0xff]  ;;  %v388_v8 = vld [vmem:[#allocation8 + $0xd0] sm:$0xff]  ;;  %s1211_s13 = sshll.u32 %s348_s28, 4  ;;  %s1213_s14 = sshll.u32 %s1209_s12, 4  ;;  %s1212_s13 = int_to_ptr.vmem [resolvable:$true] %s1211_s13  ;;  %s1214_s14 = int_to_ptr.hbm [resolvable:$true] %s1213_s14 }
  0x41   : > { %v423_v7 = vld [vmem:[#allocation8 + $0x1e8] sm:$0xff]  ;;  %v389_v9 = vld [vmem:[#allocation8 + $0xd8] sm:$0xff]  ;;  %v420_v10 = vld [vmem:[#allocation8 + $0x1d0] sm:$0xff]  ;;  %s1198_s19 = scalar_lea.sflag [#allocation5], %s1892_s20  ;;  %s1666_s27 = sshra.s32 %s1214_s14, 4  ;;  %s1667_s27 = int_to_ptr.hbm [resolvable:$true] %s1666_s27 }
  0x42   : > { %v421_v11 = vld [vmem:[#allocation8 + $0x1d8] sm:$0xff]  ;;  %v386_v12 = vld [vmem:[#allocation8 + $0xc0] sm:$0xff]  ;;  %v387_v13 = vld [vmem:[#allocation8 + $0xc8] sm:$0xff]  ;;  %s1668_s26 = scalar_lea.hbm %s1667_s27, 16  ;;  %s1672_s10 = scalar_lea.hbm %s2009_s6, 32 }
  0x43   : > { %432 = vmatpush.xpose.msra.mxu0 %v390_v4  ;;  %452 = vmatpush.xpose.msra.mxu1 %v391_v5  ;;  %v418_v14 = vld [vmem:[#allocation8 + $0x1c0] sm:$0xff]  ;;  %v419_v15 = vld [vmem:[#allocation8 + $0x1c8] sm:$0xff]  ;;  %v384_v16 = vld [vmem:[#allocation8 + $0xb0] sm:$0xff]  ;;  %p1669_p1 = scmp.ne.s32.totalorder %s1667_s27, %s1668_s26  ;;  %p1673_p12 = scmp.lt.s32.totalorder %s1667_s27, %s2009_s6 }
  0x44   : > { %472 = vmatpush.xpose.msra.mxu2 %v422_v6  ;;  %492 = vmatpush.xpose.msra.mxu3 %v423_v7  ;;  %v385_v17 = vld [vmem:[#allocation8 + $0xb8] sm:$0xff]  ;;  %v416_v18 = vld [vmem:[#allocation8 + $0x1b0] sm:$0xff]  ;;  %v382_v20 = vld [vmem:[#allocation8 + $0xa0] sm:$0xff]  ;;  %p1674_p8 = scmp.lt.s32.totalorder %s1672_s10, %s1668_s26 }
  0x45   : > { %v417_v19 = vld [vmem:[#allocation8 + $0x1b8] sm:$0xff]  ;;  %v383_v21 = vld [vmem:[#allocation8 + $0xa8] sm:$0xff]  ;;  %v414_v22 = vld [vmem:[#allocation8 + $0x1a0] sm:$0xff]  ;;  %p1670_p3 = pnand %p1669_p1, %p1861_p13 }
  0x46   : > { %v415_v23 = vld [vmem:[#allocation8 + $0x1a8] sm:$0xff]  ;;  %v380_v24 = vld [vmem:[#allocation8 + $0x90] sm:$0xff]  ;;  %v381_v25 = vld [vmem:[#allocation8 + $0x98] sm:$0xff]  ;;  %p1675_p7 = por %p1674_p8, %p1673_p12 }
  0x47   : > { %433 = vmatpush.xpose.msra.mxu0 %v388_v8  ;;  %453 = vmatpush.xpose.msra.mxu1 %v389_v9  ;;  %v412_v26 = vld [vmem:[#allocation8 + $0x190] sm:$0xff]  ;;  %v413_v27 = vld [vmem:[#allocation8 + $0x198] sm:$0xff]  ;;  %v378_v28 = vld [vmem:[#allocation8 + $0x80] sm:$0xff]  ;;  %p1671_p4 = pneg %p1670_p3 }
  0x48   : > { %473 = vmatpush.xpose.msra.mxu2 %v420_v10  ;;  %493 = vmatpush.xpose.msra.mxu3 %v421_v11  ;;  %v379_v29 = vld [vmem:[#allocation8 + $0x88] sm:$0xff]  ;;  %v410_v30 = vld [vmem:[#allocation8 + $0x180] sm:$0xff]  ;;  %v376_v32 = vld [vmem:[#allocation8 + $0x70] sm:$0xff] }
  0x49   : > { %v411_v31 = vld [vmem:[#allocation8 + $0x188] sm:$0xff]  ;;  %v377_v33 = vld [vmem:[#allocation8 + $0x78] sm:$0xff]  ;;  %v408_v34 = vld [vmem:[#allocation8 + $0x170] sm:$0xff]  ;;  %p1676_p9 = pnand %p1675_p7, %p1671_p4 }
  0x4a   : > { %v409_v35 = vld [vmem:[#allocation8 + $0x178] sm:$0xff]  ;;  %v374_v36 = vld [vmem:[#allocation8 + $0x60] sm:$0xff]  ;;  %v375_v37 = vld [vmem:[#allocation8 + $0x68] sm:$0xff] }
  0x4b   : > { %434 = vmatpush.xpose.msra.mxu0 %v386_v12  ;;  %454 = vmatpush.xpose.msra.mxu1 %v387_v13  ;;  %v406_v38 = vld [vmem:[#allocation8 + $0x160] sm:$0xff]  ;;  %v407_v39 = vld [vmem:[#allocation8 + $0x168] sm:$0xff]  ;;  %v372_v40 = vld [vmem:[#allocation8 + $0x50] sm:$0xff] }
  0x4c   : > { %474 = vmatpush.xpose.msra.mxu2 %v418_v14  ;;  %494 = vmatpush.xpose.msra.mxu3 %v419_v15  ;;  %v373_v41 = vld [vmem:[#allocation8 + $0x58] sm:$0xff]  ;;  %v404_v42 = vld [vmem:[#allocation8 + $0x150] sm:$0xff]  ;;  %v370_v44 = vld [vmem:[#allocation8 + $0x40] sm:$0xff] }
  0x4d   : > { %v405_v43 = vld [vmem:[#allocation8 + $0x158] sm:$0xff]  ;;  %v371_v45 = vld [vmem:[#allocation8 + $0x48] sm:$0xff]  ;;  %v402_v46 = vld [vmem:[#allocation8 + $0x140] sm:$0xff] }
  0x4e   : > { %v403_v47 = vld [vmem:[#allocation8 + $0x148] sm:$0xff]  ;;  %v368_v48 = vld [vmem:[#allocation8 + $0x30] sm:$0xff]  ;;  %v369_v49 = vld [vmem:[#allocation8 + $0x38] sm:$0xff] }
  0x4f   : > { %435 = vmatpush.xpose.msra.mxu0 %v384_v16  ;;  %455 = vmatpush.xpose.msra.mxu1 %v385_v17  ;;  %v400_v50 = vld [vmem:[#allocation8 + $0x130] sm:$0xff]  ;;  %v401_v51 = vld [vmem:[#allocation8 + $0x138] sm:$0xff]  ;;  %v366_v52 = vld [vmem:[#allocation8 + $0x20] sm:$0xff] }
  0x50   : > { %475 = vmatpush.xpose.msra.mxu2 %v416_v18  ;;  %495 = vmatpush.xpose.msra.mxu3 %v417_v19  ;;  %v367_v53 = vld [vmem:[#allocation8 + $0x28] sm:$0xff]  ;;  %v398_v54 = vld [vmem:[#allocation8 + $0x120] sm:$0xff]  ;;  %v364_v56 = vld [vmem:[#allocation8 + $0x10] sm:$0xff] }
  0x51   : > { %v399_v55 = vld [vmem:[#allocation8 + $0x128] sm:$0xff]  ;;  %v365_v57 = vld [vmem:[#allocation8 + $0x18] sm:$0xff]  ;;  %v396_v58 = vld [vmem:[#allocation8 + $0x110] sm:$0xff] }
  0x52   : > { %v397_v59 = vld [vmem:[#allocation8 + $0x118] sm:$0xff]  ;;  %v362_v60 = vld [vmem:[#allocation8] sm:$0xff]  ;;  %v363_v61 = vld [vmem:[#allocation8 + $0x8] sm:$0xff] }
  0x53   : > { %436 = vmatpush.xpose.msra.mxu0 %v382_v20  ;;  %456 = vmatpush.xpose.msra.mxu1 %v383_v21  ;;  %v394_v62 = vld [vmem:[#allocation8 + $0x100] sm:$0xff]  ;;  %v395_v63 = vld [vmem:[#allocation8 + $0x108] sm:$0xff]  ;;  %v563_v0 = vld [vmem:[#allocation9 + $0xf0] sm:$0xff] }
  0x54   : > { %476 = vmatpush.xpose.msra.mxu2 %v414_v22  ;;  %496 = vmatpush.xpose.msra.mxu3 %v415_v23  ;;  %v564_v1 = vld [vmem:[#allocation9 + $0xf8] sm:$0xff]  ;;  %v595_v2 = vld [vmem:[#allocation9 + $0x1f0] sm:$0xff]  ;;  %v561_v4 = vld [vmem:[#allocation9 + $0xe0] sm:$0xff] }
  0x55   : > { %v596_v3 = vld [vmem:[#allocation9 + $0x1f8] sm:$0xff]  ;;  %v562_v5 = vld [vmem:[#allocation9 + $0xe8] sm:$0xff]  ;;  %v593_v6 = vld [vmem:[#allocation9 + $0x1e0] sm:$0xff] }
  0x56   : > { %v594_v7 = vld [vmem:[#allocation9 + $0x1e8] sm:$0xff]  ;;  %v559_v8 = vld [vmem:[#allocation9 + $0xd0] sm:$0xff]  ;;  %v560_v9 = vld [vmem:[#allocation9 + $0xd8] sm:$0xff] }
  0x57   : > { %437 = vmatpush.xpose.msra.mxu0 %v380_v24  ;;  %457 = vmatpush.xpose.msra.mxu1 %v381_v25  ;;  %v591_v10 = vld [vmem:[#allocation9 + $0x1d0] sm:$0xff]  ;;  %v592_v11 = vld [vmem:[#allocation9 + $0x1d8] sm:$0xff]  ;;  %v557_v12 = vld [vmem:[#allocation9 + $0xc0] sm:$0xff] }
  0x58   : > { %477 = vmatpush.xpose.msra.mxu2 %v412_v26  ;;  %497 = vmatpush.xpose.msra.mxu3 %v413_v27  ;;  %v558_v13 = vld [vmem:[#allocation9 + $0xc8] sm:$0xff]  ;;  %v589_v14 = vld [vmem:[#allocation9 + $0x1c0] sm:$0xff]  ;;  %v555_v16 = vld [vmem:[#allocation9 + $0xb0] sm:$0xff] }
  0x59   : > { %v590_v15 = vld [vmem:[#allocation9 + $0x1c8] sm:$0xff]  ;;  %v556_v17 = vld [vmem:[#allocation9 + $0xb8] sm:$0xff]  ;;  %v587_v18 = vld [vmem:[#allocation9 + $0x1b0] sm:$0xff] }
  0x5a   : > { %v588_v19 = vld [vmem:[#allocation9 + $0x1b8] sm:$0xff]  ;;  %v553_v20 = vld [vmem:[#allocation9 + $0xa0] sm:$0xff]  ;;  %v554_v21 = vld [vmem:[#allocation9 + $0xa8] sm:$0xff] }
  0x5b   : > { %438 = vmatpush.xpose.msra.mxu0 %v378_v28  ;;  %458 = vmatpush.xpose.msra.mxu1 %v379_v29  ;;  %v585_v22 = vld [vmem:[#allocation9 + $0x1a0] sm:$0xff]  ;;  %v586_v23 = vld [vmem:[#allocation9 + $0x1a8] sm:$0xff]  ;;  %v551_v24 = vld [vmem:[#allocation9 + $0x90] sm:$0xff] }
  0x5c   : > { %478 = vmatpush.xpose.msra.mxu2 %v410_v30  ;;  %498 = vmatpush.xpose.msra.mxu3 %v411_v31  ;;  %v552_v25 = vld [vmem:[#allocation9 + $0x98] sm:$0xff]  ;;  %v1917_v26 = vld [vmem:[%s1898_s16] sm:$0xff] }
  0x5d   : > { %v1920_v27 = vld [vmem:[%s1898_s16 + $0x8] sm:$0xff]  ;;  %v583_v28 = vld [vmem:[#allocation9 + $0x190] sm:$0xff]  ;;  %v521_v30 = vrot.slane %v1917_v26, 4 }
  0x5e   : > { %v584_v29 = vld [vmem:[#allocation9 + $0x198] sm:$0xff]  ;;  %v522_v31 = vrot.slane %v1920_v27, 4 }
  0x5f   : > { %439 = vmatpush.xpose.msra.mxu0 %v376_v32  ;;  %459 = vmatpush.xpose.msra.mxu1 %v377_v33  ;;  %525 = vst [vmem:[#allocation2 + $0x10] sm:$0xf0] %v521_v30  ;;  %v549_v32 = vld [vmem:[#allocation9 + $0x80] sm:$0xff]  ;;  %v550_v33 = vld [vmem:[#allocation9 + $0x88] sm:$0xff] }
  0x60   : > { %479 = vmatpush.xpose.msra.mxu2 %v408_v34  ;;  %499 = vmatpush.xpose.msra.mxu3 %v409_v35  ;;  %527 = vst [vmem:[#allocation2 + $0x18] sm:$0xf] %v521_v30  ;;  %v511_v34 = vld [vmem:[#allocation6] sm:$0xf]  ;;  %v581_v35 = vld [vmem:[#allocation9 + $0x180] sm:$0xff] }
  0x61   : > { %526 = vst [vmem:[#allocation2] sm:$0xf0] %v522_v31  ;;  %v619_v30 = vld [vmem:[#allocation9 + $0x2b0] sm:$0xff] }
  0x62   : > { %528 = vst [vmem:[#allocation2 + $0x8] sm:$0xf] %v522_v31  ;;  %v651_v31 = vld [vmem:[#allocation9 + $0x3b0] sm:$0xff] }
  0x63   : > { %440 = vmatpush.xpose.msra.mxu0 %v374_v36  ;;  %460 = vmatpush.xpose.msra.mxu1 %v375_v37  ;;  %v582_v36 = vld [vmem:[#allocation9 + $0x188] sm:$0xff]  ;;  %v512_v37 = vld [vmem:[#allocation6 + $0x8] sm:$0xf]  ;;  %513 = vst [vmem:[#allocation2 + $0x10] sm:$0xf] %v511_v34  ;;  %v617_v34 = vld [vmem:[#allocation9 + $0x2a0] sm:$0xff] }
  0x64   : > { %480 = vmatpush.xpose.msra.mxu2 %v406_v38  ;;  %500 = vmatpush.xpose.msra.mxu3 %v407_v39  ;;  %v547_v38 = vld [vmem:[#allocation9 + $0x70] sm:$0xff]  ;;  %v548_v39 = vld [vmem:[#allocation9 + $0x78] sm:$0xff]  ;;  %514 = vst [vmem:[#allocation2] sm:$0xf] %v512_v37  ;;  %v618_v37 = vld [vmem:[#allocation9 + $0x2a8] sm:$0xff] }
  0x67   : > { %441 = vmatpush.xpose.msra.mxu0 %v372_v40  ;;  %461 = vmatpush.xpose.msra.mxu1 %v373_v41  ;;  %v579_v40 = vld [vmem:[#allocation9 + $0x170] sm:$0xff]  ;;  %v580_v41 = vld [vmem:[#allocation9 + $0x178] sm:$0xff] }
  0x68   : > { %481 = vmatpush.xpose.msra.mxu2 %v404_v42  ;;  %501 = vmatpush.xpose.msra.mxu3 %v405_v43  ;;  %v515_v42 = vld [vmem:[#allocation6] sm:$0xf0]  ;;  %v516_v43 = vld [vmem:[#allocation6 + $0x8] sm:$0xf0] }
  0x69   : > { %517 = vst [vmem:[#allocation2 + $0x18] sm:$0xf0] %v515_v42  ;;  %v613_v42 = vld [vmem:[#allocation9 + $0x280] sm:$0xff] }
  0x6a   : > { %518 = vst [vmem:[#allocation2 + $0x8] sm:$0xf0] %v516_v43  ;;  %v645_v43 = vld [vmem:[#allocation9 + $0x380] sm:$0xff] }
  0x6b   : > { %442 = vmatpush.xpose.msra.mxu0 %v370_v44  ;;  %462 = vmatpush.xpose.msra.mxu1 %v371_v45  ;;  %v545_v44 = vld [vmem:[#allocation9 + $0x60] sm:$0xff]  ;;  %v546_v45 = vld [vmem:[#allocation9 + $0x68] sm:$0xff] }
  0x6c   : > { %482 = vmatpush.xpose.msra.mxu2 %v402_v46  ;;  %502 = vmatpush.xpose.msra.mxu3 %v403_v47  ;;  %v577_v46 = vld [vmem:[#allocation9 + $0x160] sm:$0xff]  ;;  %v578_v47 = vld [vmem:[#allocation9 + $0x168] sm:$0xff] }
  0x6f   : > { %443 = vmatpush.xpose.msra.mxu0 %v368_v48  ;;  %463 = vmatpush.xpose.msra.mxu1 %v369_v49  ;;  %v543_v48 = vld [vmem:[#allocation9 + $0x50] sm:$0xff]  ;;  %v544_v49 = vld [vmem:[#allocation9 + $0x58] sm:$0xff] }
  0x70   : > { %483 = vmatpush.xpose.msra.mxu2 %v400_v50  ;;  %503 = vmatpush.xpose.msra.mxu3 %v401_v51  ;;  %v575_v50 = vld [vmem:[#allocation9 + $0x150] sm:$0xff]  ;;  %v576_v51 = vld [vmem:[#allocation9 + $0x158] sm:$0xff] }
  0x73   : > { %444 = vmatpush.xpose.msra.mxu0 %v366_v52  ;;  %464 = vmatpush.xpose.msra.mxu1 %v367_v53  ;;  %v541_v52 = vld [vmem:[#allocation9 + $0x40] sm:$0xff]  ;;  %v542_v53 = vld [vmem:[#allocation9 + $0x48] sm:$0xff] }
  0x74   : > { %484 = vmatpush.xpose.msra.mxu2 %v398_v54  ;;  %504 = vmatpush.xpose.msra.mxu3 %v399_v55  ;;  %v573_v54 = vld [vmem:[#allocation9 + $0x140] sm:$0xff]  ;;  %v574_v55 = vld [vmem:[#allocation9 + $0x148] sm:$0xff] }
  0x77   : > { %445 = vmatpush.xpose.msra.mxu0 %v364_v56  ;;  %465 = vmatpush.xpose.msra.mxu1 %v365_v57  ;;  %v539_v56 = vld [vmem:[#allocation9 + $0x30] sm:$0xff]  ;;  %v540_v57 = vld [vmem:[#allocation9 + $0x38] sm:$0xff] }
  0x78   : > { %485 = vmatpush.xpose.msra.mxu2 %v396_v58  ;;  %505 = vmatpush.xpose.msra.mxu3 %v397_v59  ;;  %v571_v58 = vld [vmem:[#allocation9 + $0x130] sm:$0xff]  ;;  %v572_v59 = vld [vmem:[#allocation9 + $0x138] sm:$0xff] }
  0x7b   : > { %446 = vmatpush.xpose.msra.mxu0 %v362_v60  ;;  %466 = vmatpush.xpose.msra.mxu1 %v363_v61  ;;  %v537_v60 = vld [vmem:[#allocation9 + $0x20] sm:$0xff]  ;;  %v538_v61 = vld [vmem:[#allocation9 + $0x28] sm:$0xff] }
  0x7c   : > { %486 = vmatpush.xpose.msra.mxu2 %v394_v62  ;;  %506 = vmatpush.xpose.msra.mxu3 %v395_v63  ;;  %v569_v62 = vld [vmem:[#allocation9 + $0x120] sm:$0xff]  ;;  %v570_v63 = vld [vmem:[#allocation9 + $0x128] sm:$0xff] }
  0x7e   : > { %447 = vmatmul.f32.vlgmr.msra.gmra.mxu0 %v1917_v26  ;;  %467 = vmatmul.f32.vlgmr.msra.gmra.mxu1 %v1920_v27 }
  0x7f   : > { %661 = vmatpush.xpose.msrb.mxu0 %v563_v0  ;;  %684 = vmatpush.xpose.msrb.mxu1 %v564_v1  ;;  %v535_v0 = vld [vmem:[#allocation9 + $0x10] sm:$0xff]  ;;  %v536_v1 = vld [vmem:[#allocation9 + $0x18] sm:$0xff] }
  0x80   : > { %707 = vmatpush.xpose.msrb.mxu2 %v595_v2  ;;  %730 = vmatpush.xpose.msrb.mxu3 %v596_v3  ;;  %v567_v2 = vld [vmem:[#allocation9 + $0x110] sm:$0xff]  ;;  %v568_v3 = vld [vmem:[#allocation9 + $0x118] sm:$0xff] }
  0x81   : > { %487 = vmatmul.f32.vlgmr.msra.gmra.mxu2 %v1917_v26  ;;  %507 = vmatmul.f32.vlgmr.msra.gmra.mxu3 %v1920_v27 }
  0x83   : > { %662 = vmatpush.xpose.msrb.mxu0 %v561_v4  ;;  %685 = vmatpush.xpose.msrb.mxu1 %v562_v5  ;;  %v533_v4 = vld [vmem:[#allocation9] sm:$0xff]  ;;  %v534_v5 = vld [vmem:[#allocation9 + $0x8] sm:$0xff] }
  0x84   : > { %708 = vmatpush.xpose.msrb.mxu2 %v593_v6  ;;  %731 = vmatpush.xpose.msrb.mxu3 %v594_v7  ;;  %v565_v6 = vld [vmem:[#allocation9 + $0x100] sm:$0xff]  ;;  %v566_v7 = vld [vmem:[#allocation9 + $0x108] sm:$0xff] }
  0x87   : > { %663 = vmatpush.xpose.msrb.mxu0 %v559_v8  ;;  %686 = vmatpush.xpose.msrb.mxu1 %v560_v9  ;;  %v627_v8 = vld [vmem:[#allocation9 + $0x2f0] sm:$0xff] }
  0x88   : > { %709 = vmatpush.xpose.msrb.mxu2 %v591_v10  ;;  %732 = vmatpush.xpose.msrb.mxu3 %v592_v11  ;;  %v659_v9 = vld [vmem:[#allocation9 + $0x3f0] sm:$0xff]  ;;  %v1928_v10 = vld [vmem:[#allocation2 + $0x10] sm:$0xff] }
  0x89   : > { %v1930_v11 = vld [vmem:[#allocation2] sm:$0xff] }
  0x8b   : > { %664 = vmatpush.xpose.msrb.mxu0 %v557_v12  ;;  %687 = vmatpush.xpose.msrb.mxu1 %v558_v13  ;;  %v660_v12 = vld [vmem:[#allocation9 + $0x3f8] sm:$0xff] }
  0x8c   : > { %710 = vmatpush.xpose.msrb.mxu2 %v589_v14  ;;  %733 = vmatpush.xpose.msrb.mxu3 %v590_v15  ;;  %v628_v13 = vld [vmem:[#allocation9 + $0x2f8] sm:$0xff]  ;;  %v625_v14 = vld [vmem:[#allocation9 + $0x2e0] sm:$0xff] }
  0x8d   : > { %v657_v15 = vld [vmem:[#allocation9 + $0x3e0] sm:$0xff] }
  0x8f   : > { %665 = vmatpush.xpose.msrb.mxu0 %v555_v16  ;;  %688 = vmatpush.xpose.msrb.mxu1 %v556_v17  ;;  %v658_v16 = vld [vmem:[#allocation9 + $0x3e8] sm:$0xff] }
  0x90   : > { %711 = vmatpush.xpose.msrb.mxu2 %v587_v18  ;;  %734 = vmatpush.xpose.msrb.mxu3 %v588_v19  ;;  %v626_v17 = vld [vmem:[#allocation9 + $0x2e8] sm:$0xff]  ;;  %v623_v18 = vld [vmem:[#allocation9 + $0x2d0] sm:$0xff] }
  0x91   : > { %v655_v19 = vld [vmem:[#allocation9 + $0x3d0] sm:$0xff] }
  0x93   : > { %666 = vmatpush.xpose.msrb.mxu0 %v553_v20  ;;  %689 = vmatpush.xpose.msrb.mxu1 %v554_v21  ;;  %v1936_v20 = vld [vmem:[#allocation2 + $0x18] sm:$0xff]  ;;  %v1938_v21 = vld [vmem:[#allocation2 + $0x8] sm:$0xff] }
  0x94   : > { %712 = vmatpush.xpose.msrb.mxu2 %v585_v22  ;;  %735 = vmatpush.xpose.msrb.mxu3 %v586_v23  ;;  %v656_v22 = vld [vmem:[#allocation9 + $0x3d8] sm:$0xff] }
  0x95   : > { %v624_v23 = vld [vmem:[#allocation9 + $0x2d8] sm:$0xff] }
  0x97   : > { %667 = vmatpush.xpose.msrb.mxu0 %v551_v24  ;;  %690 = vmatpush.xpose.msrb.mxu1 %v552_v25  ;;  %v621_v24 = vld [vmem:[#allocation9 + $0x2c0] sm:$0xff] }
  0x98   : > { %713 = vmatpush.xpose.msrb.mxu2 %v583_v28  ;;  %736 = vmatpush.xpose.msrb.mxu3 %v584_v29  ;;  %v653_v25 = vld [vmem:[#allocation9 + $0x3c0] sm:$0xff]  ;;  %v654_v28 = vld [vmem:[#allocation9 + $0x3c8] sm:$0xff] }
  0x99   : > { %v622_v29 = vld [vmem:[#allocation9 + $0x2c8] sm:$0xff] }
  0x9b   : > { %668 = vmatpush.xpose.msrb.mxu0 %v549_v32  ;;  %691 = vmatpush.xpose.msrb.mxu1 %v550_v33  ;;  %v652_v32 = vld [vmem:[#allocation9 + $0x3b8] sm:$0xff] }
  0x9c   : > { %714 = vmatpush.xpose.msrb.mxu2 %v581_v35  ;;  %737 = vmatpush.xpose.msrb.mxu3 %v582_v36  ;;  %v620_v33 = vld [vmem:[#allocation9 + $0x2b8] sm:$0xff]  ;;  %v649_v35 = vld [vmem:[#allocation9 + $0x3a0] sm:$0xff]  ;;  %v650_v36 = vld [vmem:[#allocation9 + $0x3a8] sm:$0xff] }
  0x9f   : > { %669 = vmatpush.xpose.msrb.mxu0 %v547_v38  ;;  %692 = vmatpush.xpose.msrb.mxu1 %v548_v39  ;;  %v615_v38 = vld [vmem:[#allocation9 + $0x290] sm:$0xff] }
  0xa0   : > { %715 = vmatpush.xpose.msrb.mxu2 %v579_v40  ;;  %738 = vmatpush.xpose.msrb.mxu3 %v580_v41  ;;  %v647_v39 = vld [vmem:[#allocation9 + $0x390] sm:$0xff]  ;;  %v648_v40 = vld [vmem:[#allocation9 + $0x398] sm:$0xff] }
  0xa1   : > { %v616_v41 = vld [vmem:[#allocation9 + $0x298] sm:$0xff] }
  0xa3   : > { %670 = vmatpush.xpose.msrb.mxu0 %v545_v44  ;;  %693 = vmatpush.xpose.msrb.mxu1 %v546_v45  ;;  %v646_v44 = vld [vmem:[#allocation9 + $0x388] sm:$0xff] }
  0xa4   : > { %716 = vmatpush.xpose.msrb.mxu2 %v577_v46  ;;  %739 = vmatpush.xpose.msrb.mxu3 %v578_v47  ;;  %v614_v45 = vld [vmem:[#allocation9 + $0x288] sm:$0xff]  ;;  %v611_v46 = vld [vmem:[#allocation9 + $0x270] sm:$0xff] }
  0xa5   : > { %v643_v47 = vld [vmem:[#allocation9 + $0x370] sm:$0xff] }
  0xa7   : > { %671 = vmatpush.xpose.msrb.mxu0 %v543_v48  ;;  %694 = vmatpush.xpose.msrb.mxu1 %v544_v49  ;;  %v644_v48 = vld [vmem:[#allocation9 + $0x378] sm:$0xff]  ;;  %v609_v49 = vld [vmem:[#allocation9 + $0x260] sm:$0xff] }
  0xa8   : > { %717 = vmatpush.xpose.msrb.mxu2 %v575_v50  ;;  %740 = vmatpush.xpose.msrb.mxu3 %v576_v51  ;;  %v641_v50 = vld [vmem:[#allocation9 + $0x360] sm:$0xff]  ;;  %v642_v51 = vld [vmem:[#allocation9 + $0x368] sm:$0xff] }
  0xab   : > { %672 = vmatpush.xpose.msrb.mxu0 %v541_v52  ;;  %695 = vmatpush.xpose.msrb.mxu1 %v542_v53  ;;  %v607_v52 = vld [vmem:[#allocation9 + $0x250] sm:$0xff] }
  0xac   : > { %718 = vmatpush.xpose.msrb.mxu2 %v573_v54  ;;  %741 = vmatpush.xpose.msrb.mxu3 %v574_v55  ;;  %v639_v53 = vld [vmem:[#allocation9 + $0x350] sm:$0xff]  ;;  %v640_v54 = vld [vmem:[#allocation9 + $0x358] sm:$0xff]  ;;  %v605_v55 = vld [vmem:[#allocation9 + $0x240] sm:$0xff] }
  0xaf   : > { %673 = vmatpush.xpose.msrb.mxu0 %v539_v56  ;;  %696 = vmatpush.xpose.msrb.mxu1 %v540_v57  ;;  %v637_v56 = vld [vmem:[#allocation9 + $0x340] sm:$0xff]  ;;  %v638_v57 = vld [vmem:[#allocation9 + $0x348] sm:$0xff] }
  0xb0   : > { %719 = vmatpush.xpose.msrb.mxu2 %v571_v58  ;;  %742 = vmatpush.xpose.msrb.mxu3 %v572_v59  ;;  %v603_v58 = vld [vmem:[#allocation9 + $0x230] sm:$0xff]  ;;  %v612_v59 = vld [vmem:[#allocation9 + $0x278] sm:$0xff] }
  0xb3   : > { %674 = vmatpush.xpose.msrb.mxu0 %v537_v60  ;;  %697 = vmatpush.xpose.msrb.mxu1 %v538_v61  ;;  %v601_v60 = vld [vmem:[#allocation9 + $0x220] sm:$0xff]  ;;  %v635_v61 = vld [vmem:[#allocation9 + $0x330] sm:$0xff] }
  0xb4   : > { %720 = vmatpush.xpose.msrb.mxu2 %v569_v62  ;;  %743 = vmatpush.xpose.msrb.mxu3 %v570_v63  ;;  %v636_v62 = vld [vmem:[#allocation9 + $0x338] sm:$0xff]  ;;  %v610_v63 = vld [vmem:[#allocation9 + $0x268] sm:$0xff] }
  0xb7   : > { %675 = vmatpush.xpose.msrb.mxu0 %v535_v0  ;;  %698 = vmatpush.xpose.msrb.mxu1 %v536_v1  ;;  %v599_v0 = vld [vmem:[#allocation9 + $0x210] sm:$0xff]  ;;  %v633_v1 = vld [vmem:[#allocation9 + $0x320] sm:$0xff] }
  0xb8   : > { %721 = vmatpush.xpose.msrb.mxu2 %v567_v2  ;;  %744 = vmatpush.xpose.msrb.mxu3 %v568_v3  ;;  %v634_v2 = vld [vmem:[#allocation9 + $0x328] sm:$0xff]  ;;  %v608_v3 = vld [vmem:[#allocation9 + $0x258] sm:$0xff] }
  0xbb   : > { %676 = vmatpush.xpose.msrb.mxu0 %v533_v4  ;;  %699 = vmatpush.xpose.msrb.mxu1 %v534_v5  ;;  %v631_v4 = vld [vmem:[#allocation9 + $0x310] sm:$0xff]  ;;  %v632_v5 = vld [vmem:[#allocation9 + $0x318] sm:$0xff] }
  0xbc   : > { %722 = vmatpush.xpose.msrb.mxu2 %v565_v6  ;;  %745 = vmatpush.xpose.msrb.mxu3 %v566_v7  ;;  %v606_v6 = vld [vmem:[#allocation9 + $0x248] sm:$0xff]  ;;  %v629_v7 = vld [vmem:[#allocation9 + $0x300] sm:$0xff] }
  0xbe   : > { %677 = vmatmul.f32.vlgmr.msrb.gmra.mxu0 %v1928_v10  ;;  %700 = vmatmul.f32.vlgmr.msrb.gmra.mxu1 %v1930_v11 }
  0xbf   : > { %753 = vmatpush.xpose.msra.mxu0 %v627_v8  ;;  %723 = vmatmul.f32.vlgmr.msrb.gmra.mxu2 %v1928_v10  ;;  %v630_v8 = vld [vmem:[#allocation9 + $0x308] sm:$0xff] }
  0xc0   : > { %799 = vmatpush.xpose.msra.mxu2 %v659_v9  ;;  %746 = vmatmul.f32.vlgmr.msrb.gmra.mxu3 %v1930_v11  ;;  %v604_v9 = vld [vmem:[#allocation9 + $0x238] sm:$0xff] }
  0xc1   : > { %822 = vmatpush.xpose.msra.mxu3 %v660_v12  ;;  %776 = vmatpush.xpose.msra.mxu1 %v628_v13  ;;  %v597_v12 = vld [vmem:[#allocation9 + $0x200] sm:$0xff]  ;;  %v602_v13 = vld [vmem:[#allocation9 + $0x228] sm:$0xff] }
  0xc3   : > { %754 = vmatpush.xpose.msra.mxu0 %v625_v14  ;;  %v600_v14 = vld [vmem:[#allocation9 + $0x218] sm:$0xff] }
  0xc4   : > { %800 = vmatpush.xpose.msra.mxu2 %v657_v15  ;;  %v598_v15 = vld [vmem:[#allocation9 + $0x208] sm:$0xff] }
  0xc5   : > { %823 = vmatpush.xpose.msra.mxu3 %v658_v16  ;;  %777 = vmatpush.xpose.msra.mxu1 %v626_v17 }
  0xc6   : > { %680 = vmatmul.f32.gmra.mxu0 %v1936_v20  ;;  %703 = vmatmul.f32.gmra.mxu1 %v1938_v21 }
  0xc7   : > { %755 = vmatpush.xpose.msra.mxu0 %v623_v18  ;;  %726 = vmatmul.f32.gmra.mxu2 %v1936_v20 }
  0xc8   : > { %801 = vmatpush.xpose.msra.mxu2 %v655_v19  ;;  %749 = vmatmul.f32.gmra.mxu3 %v1938_v21 }
  0xc9   : > { %824 = vmatpush.xpose.msra.mxu3 %v656_v22  ;;  %778 = vmatpush.xpose.msra.mxu1 %v624_v23  ;;  %v353_v23 = vld [vmem:[#allocation12 + $0x1] ss:$8 sm:$0x3] }
  0xcb   : > { %756 = vmatpush.xpose.msra.mxu0 %v621_v24  ;;  %v846_v24 = vperm.slane %v353_v23, 0 }
  0xcc   : > { %802 = vmatpush.xpose.msra.mxu2 %v653_v25 }
  0xcd   : > { %825 = vmatpush.xpose.msra.mxu3 %v654_v28  ;;  %779 = vmatpush.xpose.msra.mxu1 %v622_v29 }
  0xcf   : > { %757 = vmatpush.xpose.msra.mxu0 %v619_v30 }
  0xd0   : > { %803 = vmatpush.xpose.msra.mxu2 %v651_v31  ;;  %v351_v31 = vld [vmem:[#allocation12] ss:$8 sm:$0x3] }
  0xd1   : > { %826 = vmatpush.xpose.msra.mxu3 %v652_v32  ;;  %780 = vmatpush.xpose.msra.mxu1 %v620_v33 }
  0xd3   : > { %758 = vmatpush.xpose.msra.mxu0 %v617_v34 }
  0xd4   : > { %804 = vmatpush.xpose.msra.mxu2 %v649_v35 }
  0xd5   : > { %827 = vmatpush.xpose.msra.mxu3 %v650_v36  ;;  %781 = vmatpush.xpose.msra.mxu1 %v618_v37  ;;  %v847_v37 = vperm.slane %v353_v23, 1  ;;  %v1059_v23 = vld [vmem:[#allocation11 + $0x1e8] sm:$0xff] }
  0xd7   : > { %759 = vmatpush.xpose.msra.mxu0 %v615_v38 }
  0xd8   : > { %805 = vmatpush.xpose.msra.mxu2 %v647_v39  ;;  %v428_v39 = vperm.slane %v351_v31, 1 }
  0xd9   : > { %828 = vmatpush.xpose.msra.mxu3 %v648_v40  ;;  %782 = vmatpush.xpose.msra.mxu1 %v616_v41 }
  0xdb   : > { %760 = vmatpush.xpose.msra.mxu0 %v613_v42 }
  0xdc   : > { %806 = vmatpush.xpose.msra.mxu2 %v645_v43 }
  0xdd   : > { %829 = vmatpush.xpose.msra.mxu3 %v646_v44  ;;  %783 = vmatpush.xpose.msra.mxu1 %v614_v45 }
  0xdf   : > { %761 = vmatpush.xpose.msra.mxu0 %v611_v46 }
  0xe0   : > { %807 = vmatpush.xpose.msra.mxu2 %v643_v47 }
  0xe1   : > { %830 = vmatpush.xpose.msra.mxu3 %v644_v48  ;;  %784 = vmatpush.xpose.msra.mxu1 %v612_v59  ;;  %v355_v48 = vld [vmem:[#allocation12 + $0x2] ss:$8 sm:$0x3] }
  0xe2   : > { %v855_v59 = vperm.slane %v355_v48, 0 }
  0xe3   : > { %762 = vmatpush.xpose.msra.mxu0 %v609_v49 }
  0xe4   : > { %808 = vmatpush.xpose.msra.mxu2 %v641_v50 }
  0xe5   : > { %831 = vmatpush.xpose.msra.mxu3 %v642_v51  ;;  %785 = vmatpush.xpose.msra.mxu1 %v610_v63  ;;  %v856_v51 = vperm.slane %v355_v48, 1 }
  0xe7   : > { %763 = vmatpush.xpose.msra.mxu0 %v607_v52 }
  0xe8   : > { %809 = vmatpush.xpose.msra.mxu2 %v639_v53 }
  0xe9   : > { %832 = vmatpush.xpose.msra.mxu3 %v640_v54  ;;  %786 = vmatpush.xpose.msra.mxu1 %v608_v3 }
  0xeb   : > { %764 = vmatpush.xpose.msra.mxu0 %v605_v55 }
  0xec   : > { %810 = vmatpush.xpose.msra.mxu2 %v637_v56 }
  0xed   : > { %833 = vmatpush.xpose.msra.mxu3 %v638_v57  ;;  %787 = vmatpush.xpose.msra.mxu1 %v606_v6 }
  0xef   : > { %765 = vmatpush.xpose.msra.mxu0 %v603_v58 }
  0xf0   : > { %811 = vmatpush.xpose.msra.mxu2 %v635_v61 }
  0xf1   : > { %834 = vmatpush.xpose.msra.mxu3 %v636_v62  ;;  %788 = vmatpush.xpose.msra.mxu1 %v604_v9 }
  0xf3   : > { %766 = vmatpush.xpose.msra.mxu0 %v601_v60 }
  0xf4   : > { %812 = vmatpush.xpose.msra.mxu2 %v633_v1 }
  0xf5   : > { %835 = vmatpush.xpose.msra.mxu3 %v634_v2  ;;  %789 = vmatpush.xpose.msra.mxu1 %v602_v13 }
  0xf7   : > { %767 = vmatpush.xpose.msra.mxu0 %v599_v0 }
  0xf8   : > { %813 = vmatpush.xpose.msra.mxu2 %v631_v4 }
  0xf9   : > { %836 = vmatpush.xpose.msra.mxu3 %v632_v5  ;;  %790 = vmatpush.xpose.msra.mxu1 %v600_v14 }
  0xfb   : > { %768 = vmatpush.xpose.msra.mxu0 %v597_v12  ;;  %v448_v16 = vpop.f32.mrf.mxu0  ;;  %v468_v17 = vpop.f32.mrf.mxu1 }
  0xfc   : > { %814 = vmatpush.xpose.msra.mxu2 %v629_v7 }
  0xfd   : > { %837 = vmatpush.xpose.msra.mxu3 %v630_v8  ;;  %791 = vmatpush.xpose.msra.mxu1 %v598_v15 }
  0xfe   : > { %769 = vmatmul.f32.vlgmr.msra.gmra.mxu0 %v1928_v10 }
  0xff   : > { %815 = vmatmul.f32.vlgmr.msra.gmra.mxu2 %v1928_v10 }
 0x100   : > { %838 = vmatmul.f32.vlgmr.msra.gmra.mxu3 %v1930_v11  ;;  %792 = vmatmul.f32.vlgmr.msra.gmra.mxu1 %v1930_v11 }
 0x104   : > { %v508_v18 = vpop.f32.mrf.mxu3  ;;  %v488_v19 = vpop.f32.mrf.mxu2 }
 0x105   : > { %v489_v43 = vadd.f32 %v488_v19, %v428_v39  ;;  %v1028_v19 = vld [vmem:[#allocation11 + $0xf0] sm:$0xff]  ;;  %v1053_v39 = vld [vmem:[#allocation11 + $0x1b8] sm:$0xff] }
 0x106   : > { %772 = vmatmul.f32.gmra.mxu0 %v1936_v20 }
 0x107   : > { %818 = vmatmul.f32.gmra.mxu2 %v1936_v20  ;;  %v427_v20 = vperm.slane %v351_v31, 0  ;;  %v509_v45 = vadd.f32 %v508_v18, %v489_v43  ;;  %v1061_v18 = vld [vmem:[#allocation11 + $0x1f8] sm:$0xff]  ;;  %v1024_v31 = vld [vmem:[#allocation11 + $0xd0] sm:$0xff] }
 0x108   : > { %841 = vmatmul.f32.gmra.mxu3 %v1938_v21  ;;  %795 = vmatmul.f32.gmra.mxu1 %v1938_v21 }
 0x109   : > { %v449_v35 = vadd.f32 %v448_v16, %v427_v20  ;;  %v1055_v20 = vld [vmem:[#allocation11 + $0x1c8] sm:$0xff] }
 0x10b   : > { %v469_v40 = vadd.f32 %v468_v17, %v449_v35  ;;  %v1029_v17 = vld [vmem:[#allocation11 + $0xf8] sm:$0xff]  ;;  %v1054_v35 = vld [vmem:[#allocation11 + $0x1c0] sm:$0xff] }
 0x13b   : > { %v678_v22 = vpop.f32.mrf.mxu0  ;;  %v701_v10 = vpop.f32.mrf.mxu1 }
 0x13c   : > { %v702_v32 = vadd.f32 %v701_v10, %v678_v22  ;;  %v1060_v22 = vld [vmem:[#allocation11 + $0x1f0] sm:$0xff]  ;;  %v1027_v10 = vld [vmem:[#allocation11 + $0xe8] sm:$0xff] }
 0x13e   : > { %v850_v11 = vadd.f32 %v846_v24, %v702_v32  ;;  %v1056_v32 = vld [vmem:[#allocation11 + $0x1d0] sm:$0xff] }
 0x142   : > { %v724_v25 = vpop.f32.mrf.mxu2 }
 0x143   : > { %v747_v28 = vpop.f32.mrf.mxu3  ;;  %v681_v29 = vpop.f32.mrf.mxu0 }
 0x144   : > { %v704_v30 = vpop.f32.mrf.mxu1  ;;  %v748_v41 = vadd.f32 %v747_v28, %v724_v25  ;;  %v1058_v25 = vld [vmem:[#allocation11 + $0x1e0] sm:$0xff] }
 0x145   : > { %v705_v33 = vadd.f32 %v704_v30, %v681_v29  ;;  %v1025_v29 = vld [vmem:[#allocation11 + $0xd8] sm:$0xff] }
 0x146   : > { %v851_v44 = vadd.f32 %v847_v37, %v748_v41  ;;  %v1057_v30 = vld [vmem:[#allocation11 + $0x1d8] sm:$0xff]  ;;  %v1020_v41 = vld [vmem:[#allocation11 + $0xb0] sm:$0xff] }
 0x147   : > { %v852_v34 = vadd.f32 %v846_v24, %v705_v33  ;;  %v1026_v24 = vld [vmem:[#allocation11 + $0xe0] sm:$0xff]  ;;  %v1023_v33 = vld [vmem:[#allocation11 + $0xc8] sm:$0xff] }
 0x149   : > { %877 = vmatpush.xpose.msrb.mxu0 %v852_v34 }
 0x14a   : > { %v727_v36 = vpop.f32.mrf.mxu2 }
 0x14b   : > { %v750_v21 = vpop.f32.mrf.mxu3 }
 0x14c   : > { %v751_v38 = vadd.f32 %v750_v21, %v727_v36 }
 0x14d   : > { %878 = vmatpush.xpose.msrb.mxu0 %v850_v11  ;;  %v1022_v11 = vld [vmem:[#allocation11 + $0xc0] sm:$0xff] }
 0x14e   : > { %v853_v42 = vadd.f32 %v847_v37, %v751_v38  ;;  %v1021_v38 = vld [vmem:[#allocation11 + $0xb8] sm:$0xff] }
 0x150   : > { %945 = vmatpush.xpose.msrb.mxu2 %v853_v42  ;;  %879 = vmatmul.f32.vlgmr.msrb.gmra.mxu0 %v469_v40  ;;  %v1052_v42 = vld [vmem:[#allocation11 + $0x1b0] sm:$0xff] }
 0x151   : > { %1067 = vmatpush.xpose.msra.mxu0 %v1028_v19  ;;  %v1042_v19 = vld [vmem:[#allocation11 + $0x160] sm:$0xff] }
 0x154   : > { %946 = vmatpush.xpose.msrb.mxu2 %v851_v44 }
 0x155   : > { %1068 = vmatpush.xpose.msra.mxu0 %v1026_v24  ;;  %v1007_v24 = vld [vmem:[#allocation11 + $0x48] sm:$0xff] }
 0x157   : > { %947 = vmatmul.f32.vlgmr.msrb.gmra.mxu2 %v509_v45 }
 0x158   : > { %1107 = vmatpush.xpose.msra.mxu2 %v1060_v22  ;;  %v1041_v22 = vld [vmem:[#allocation11 + $0x158] sm:$0xff] }
 0x159   : > { %1069 = vmatpush.xpose.msra.mxu0 %v1024_v31  ;;  %v1037_v31 = vld [vmem:[#allocation11 + $0x138] sm:$0xff] }
 0x15c   : > { %1108 = vmatpush.xpose.msra.mxu2 %v1058_v25  ;;  %v1039_v25 = vld [vmem:[#allocation11 + $0x148] sm:$0xff] }
 0x15d   : > { %1070 = vmatpush.xpose.msra.mxu0 %v1022_v11  ;;  %v1002_v11 = vld [vmem:[#allocation11 + $0x20] sm:$0xff] }
 0x160   : > { %1109 = vmatpush.xpose.msra.mxu2 %v1056_v32  ;;  %v1004_v32 = vld [vmem:[#allocation11 + $0x30] sm:$0xff] }
 0x161   : > { %1071 = vmatpush.xpose.msra.mxu0 %v1020_v41  ;;  %v998_v41 = vld [vmem:[#allocation11] sm:$0xff] }
 0x164   : > { %1110 = vmatpush.xpose.msra.mxu2 %v1054_v35  ;;  %v1034_v35 = vld [vmem:[#allocation11 + $0x120] sm:$0xff] }
 0x168   : > { %1111 = vmatpush.xpose.msra.mxu2 %v1052_v42  ;;  %v1030_v42 = vld [vmem:[#allocation11 + $0x100] sm:$0xff] }
 0x17b   : > { %v770_v49 = vpop.f32.mrf.mxu0 }
 0x17d   : > { %v793_v52 = vpop.f32.mrf.mxu1 }
 0x17e   : > { %v794_v58 = vadd.f32 %v793_v52, %v770_v49 }
 0x180   : > { %v859_v63 = vadd.f32 %v855_v59, %v794_v58  ;;  %v1049_v58 = vld [vmem:[#allocation11 + $0x198] sm:$0xff] }
 0x182   : > { %v816_v46 = vpop.f32.mrf.mxu2 }
 0x183   : > { %v839_v47 = vpop.f32.mrf.mxu3  ;;  %v773_v60 = vpop.f32.mrf.mxu0 }
 0x184   : > { %v840_v50 = vadd.f32 %v839_v47, %v816_v46  ;;  %v1019_v46 = vld [vmem:[#allocation11 + $0xa8] sm:$0xff] }
 0x185   : > { %v796_v61 = vpop.f32.mrf.mxu1  ;;  %v1051_v47 = vld [vmem:[#allocation11 + $0x1a8] sm:$0xff] }
 0x186   : > { %v860_v56 = vadd.f32 %v856_v51, %v840_v50  ;;  %v797_v62 = vadd.f32 %v796_v61, %v773_v60  ;;  %v1018_v50 = vld [vmem:[#allocation11 + $0xa0] sm:$0xff]  ;;  %v1016_v60 = vld [vmem:[#allocation11 + $0x90] sm:$0xff] }
 0x187   : > { %1072 = vmatpush.xpose.msra.mxu0 %v1018_v50  ;;  %v1048_v61 = vld [vmem:[#allocation11 + $0x190] sm:$0xff] }
 0x188   : > { %v861_v0 = vadd.f32 %v855_v59, %v797_v62 }
 0x18a   : > { %v819_v53 = vpop.f32.mrf.mxu2  ;;  %925 = vmatpush.msrb.mxu1 %v861_v0 }
 0x18b   : > { %v842_v54 = vpop.f32.mrf.mxu3  ;;  %1073 = vmatpush.xpose.msra.mxu0 %v1016_v60 }
 0x18c   : > { %v843_v55 = vadd.f32 %v842_v54, %v819_v53  ;;  %926 = vmatpush.msrb.mxu1 %v859_v63 }
 0x18e   : > { %v862_v57 = vadd.f32 %v856_v51, %v843_v55  ;;  %1087 = vmatpush.xpose.msra.mxu1 %v1029_v17  ;;  %v1050_v51 = vld [vmem:[#allocation11 + $0x1a0] sm:$0xff]  ;;  %v1043_v17 = vld [vmem:[#allocation11 + $0x168] sm:$0xff] }
 0x18f   : > { %1112 = vmatpush.xpose.msra.mxu2 %v1050_v51 }
 0x190   : > { %992 = vmatpush.msrb.mxu3 %v862_v57  ;;  %v1017_v57 = vld [vmem:[#allocation11 + $0x98] sm:$0xff] }
 0x192   : > { %993 = vmatpush.msrb.mxu3 %v860_v56  ;;  %1088 = vmatpush.xpose.msra.mxu1 %v1027_v10  ;;  %v1008_v10 = vld [vmem:[#allocation11 + $0x50] sm:$0xff] }
 0x193   : > { %1113 = vmatpush.xpose.msra.mxu2 %v1048_v61 }
 0x194   : > { %1127 = vmatpush.xpose.msra.mxu3 %v1061_v18  ;;  %v1010_v18 = vld [vmem:[#allocation11 + $0x60] sm:$0xff] }
 0x196   : > { %1089 = vmatpush.xpose.msra.mxu1 %v1025_v29  ;;  %v1038_v29 = vld [vmem:[#allocation11 + $0x140] sm:$0xff] }
 0x198   : > { %1128 = vmatpush.xpose.msra.mxu3 %v1059_v23  ;;  %v1040_v23 = vld [vmem:[#allocation11 + $0x150] sm:$0xff] }
 0x19a   : > { %1090 = vmatpush.xpose.msra.mxu1 %v1023_v33  ;;  %v1036_v33 = vld [vmem:[#allocation11 + $0x130] sm:$0xff] }
 0x19c   : > { %1129 = vmatpush.xpose.msra.mxu3 %v1057_v30  ;;  %v1005_v30 = vld [vmem:[#allocation11 + $0x38] sm:$0xff] }
 0x19e   : > { %1091 = vmatpush.xpose.msra.mxu1 %v1021_v38  ;;  %v1032_v38 = vld [vmem:[#allocation11 + $0x110] sm:$0xff] }
 0x1a0   : > { %1130 = vmatpush.xpose.msra.mxu3 %v1055_v20  ;;  %v1003_v20 = vld [vmem:[#allocation11 + $0x28] sm:$0xff] }
 0x1a2   : > { %1092 = vmatpush.xpose.msra.mxu1 %v1019_v46 }
 0x1a4   : > { %1131 = vmatpush.xpose.msra.mxu3 %v1053_v39  ;;  %v999_v39 = vld [vmem:[#allocation11 + $0x8] sm:$0xff] }
 0x1a6   : > { %1093 = vmatpush.xpose.msra.mxu1 %v1017_v57 }
 0x1a8   : > { %1132 = vmatpush.xpose.msra.mxu3 %v1051_v47 }
 0x1ac   : > { %1133 = vmatpush.xpose.msra.mxu3 %v1049_v58 }
 0x1cd   : > { %v880_v3 = vpop.f32.mrf.mxu0 }
 0x1ce   : > { %v884_v4 = vsel %vm883_vm0, %v880_v3, -inf }
 0x1da   : > { %v948_v1 = vpop.f32.mrf.mxu2 }
 0x1db   : > { %v951_v2 = vsel %vm883_vm0, %v948_v1, -inf }
 0x1dc   : > { %952 = vmax.xlane.f32.xlu0 %v951_v2  ;;  %v1047_v2 = vld [vmem:[#allocation11 + $0x188] sm:$0xff] }
 0x1dd   : > { %1134 = vmatpush.xpose.msra.mxu3 %v1047_v2 }
 0x1e4   : > { %885 = vmax.xlane.f32.xlu0 %v884_v4  ;;  %v1014_v4 = vld [vmem:[#allocation11 + $0x80] sm:$0xff] }
 0x1e5   : > { %1074 = vmatpush.xpose.msra.mxu0 %v1014_v4 }
 0x24f   : > { %v953_v5 = vpop.xlane.xlu0 %952 }
 0x250   : > { %v954_v6 = vsub.f32 %v948_v1, %v953_v5  ;;  %v1015_v1 = vld [vmem:[#allocation11 + $0x88] sm:$0xff]  ;;  %v1046_v5 = vld [vmem:[#allocation11 + $0x180] sm:$0xff] }
 0x251   : > { %1094 = vmatpush.xpose.msra.mxu1 %v1015_v1  ;;  %1114 = vmatpush.xpose.msra.mxu2 %v1046_v5 }
 0x252   : > { %v955_v7 = vmul.f32 1.442695, %v954_v6 }
 0x254   : > { %1460 = vpow2.f32 %v955_v7 }
 0x257   : > { %v886_v8 = vpop.xlane.xlu0 %885 }
 0x258   : > { %v887_v9 = vsub.f32 %v880_v3, %v886_v8 }
 0x25a   : > { %v1954_v12 = vpop.eup %1460  ;;  %v888_v13 = vmul.f32 1.442695, %v887_v9  ;;  %v1013_v9 = vld [vmem:[#allocation11 + $0x78] sm:$0xff] }
 0x25b   : > { %v957_v14 = vsel %vm883_vm0, %v1954_v12, 0.0  ;;  %1095 = vmatpush.xpose.msra.mxu1 %v1013_v9 }
 0x25c   : > { %1462 = vpow2.f32 %v888_v13  ;;  %958 = vadd.xlane.f32.xlu1 %v957_v14  ;;  %v1012_v13 = vld [vmem:[#allocation11 + $0x70] sm:$0xff] }
 0x25d   : > { %v1044_v14 = vld [vmem:[#allocation11 + $0x170] sm:$0xff]  ;;  %1075 = vmatpush.xpose.msra.mxu0 %v1012_v13 }
 0x25e   : > { %1115 = vmatpush.xpose.msra.mxu2 %v1044_v14 }
 0x261   : > { %1076 = vmatpush.xpose.msra.mxu0 %v1010_v18 }
 0x262   : > { %v1958_v15 = vpop.eup %1462  ;;  %1116 = vmatpush.xpose.msra.mxu2 %v1042_v19 }
 0x263   : > { %v890_v16 = vsel %vm883_vm0, %v1958_v15, 0.0 }
 0x264   : > { %891 = vadd.xlane.f32.xlu1 %v890_v16  ;;  %v1011_v16 = vld [vmem:[#allocation11 + $0x68] sm:$0xff] }
 0x265   : > { %1096 = vmatpush.xpose.msra.mxu1 %v1011_v16  ;;  %1077 = vmatpush.xpose.msra.mxu0 %v1008_v10 }
 0x266   : > { %1117 = vmatpush.xpose.msra.mxu2 %v1040_v23 }
 0x26a   : > { %1118 = vmatpush.xpose.msra.mxu2 %v1038_v29 }
 0x26e   : > { %1119 = vmatpush.xpose.msra.mxu2 %v1036_v33 }
 0x272   : > { %1120 = vmatpush.xpose.msra.mxu2 %v1034_v35 }
 0x276   : > { %1121 = vmatpush.xpose.msra.mxu2 %v1032_v38 }
 0x27a   : > { %1122 = vmatpush.xpose.msra.mxu2 %v1030_v42 }
 0x2cf   : > { %v959_v28 = vpop.xlane.xlu1 %958 }
 0x2d0   : > { %1464 = vrcp.f32 %v959_v28  ;;  %v971_v40 = vand.u32 2147483648, %v959_v28  ;;  %v969_v44 = vand.u32 2147483647, %v959_v28  ;;  %vm965_vm2 = vweird.f32 %v959_v28 }
 0x2d2   : > { %v972_v49 = vor.u32 1.1754944e-38, %v971_v40  ;;  %vm970_vm4 = vcmp.eq.f32.partialorder %v969_v44, 8.507059e+37  ;;  %v1031_v40 = vld [vmem:[#allocation11 + $0x108] sm:$0xff] }
 0x2d6   : > { %v1465_v34 = vpop.eup %1464 }
 0x2d7   : > { %v961_v36 = vmul.f32 %v1465_v34, %v959_v28  ;;  %v892_v21 = vpop.xlane.xlu1 %891  ;;  %vm966_vm1 = vweird.f32 %v1465_v34  ;;  %v1006_v28 = vld [vmem:[#allocation11 + $0x40] sm:$0xff] }
 0x2d8   : > { %1466 = vrcp.f32 %v892_v21  ;;  %vm967_vm3 = vmor %vm965_vm2, %vm966_vm1  ;;  %v904_v59 = vand.u32 2147483648, %v892_v21  ;;  %v902_v63 = vand.u32 2147483647, %v892_v21  ;;  %vm898_vm6 = vweird.f32 %v892_v21  ;;  %1078 = vmatpush.xpose.msra.mxu0 %v1006_v28 }
 0x2d9   : > { %v962_v37 = vsub.f32 1.0, %v961_v36  ;;  %v1001_v36 = vld [vmem:[#allocation11 + $0x18] sm:$0xff] }
 0x2da   : > { %v905_v3 = vor.u32 1.1754944e-38, %v904_v59  ;;  %vm903_vm8 = vcmp.eq.f32.partialorder %v902_v63, 8.507059e+37  ;;  %v1739_v59 = vmov 256.0  }
 0x2db   : > { %v963_v43 = vmul.f32 %v1465_v34, %v962_v37  ;;  %v1000_v37 = vld [vmem:[#allocation11 + $0x10] sm:$0xff]  ;;  %1468 = vrcp.f32 %v1739_v59 }
 0x2dc   : > { %1079 = vmatpush.xpose.msra.mxu0 %v1004_v32 }
 0x2dd   : > { %v964_v45 = vadd.f32 %v1465_v34, %v963_v43 }
 0x2de   : > { %v1467_v48 = vpop.eup %1466 }
 0x2df   : > { %v968_v52 = vsel %vm967_vm3, %v1465_v34, %v964_v45  ;;  %v894_v53 = vmul.f32 %v1467_v48, %v892_v21  ;;  %vm899_vm5 = vweird.f32 %v1467_v48  ;;  %v1035_v34 = vld [vmem:[#allocation11 + $0x128] sm:$0xff]  ;;  %v1033_v21 = vld [vmem:[#allocation11 + $0x118] sm:$0xff] }
 0x2e0   : > { %v973_v54 = vsel %vm970_vm4, %v972_v49, %v968_v52  ;;  %vm900_vm7 = vmor %vm898_vm6, %vm899_vm5  ;;  %1080 = vmatpush.xpose.msra.mxu0 %v1002_v11  ;;  %v357_v45 = vld [vmem:[#allocation12 + $0x3] ss:$8 sm:$0x3] }
 0x2e1   : > { %v895_v55 = vsub.f32 1.0, %v894_v53  ;;  %v974_v56 = vmul.f32 %v1954_v12, %v973_v54  ;;  %v1045_v12 = vld [vmem:[#allocation11 + $0x178] sm:$0xff]  ;;  %v1063_v46 = vperm.slane %v357_v45, 0  ;;  %v1064_v49 = vperm.slane %v357_v45, 1  ;;  %v1469_v60 = vpop.eup %1468 }
 0x2e2   : > { %1135 = vmatpush.xpose.msra.mxu3 %v1045_v12  ;;  %v1153_v61 = vmul.f32 256.0, %v1469_v60  ;;  %vm1157_vm9 = vweird.f32 %v1469_v60 }
 0x2e3   : > { %v896_v62 = vmul.f32 %v1467_v48, %v895_v55  ;;  %1352 = vmatmul.msk.f32.vlgmr.msrb.gmra.mxu3 %vm883_vm0, %v974_v56 }
 0x2e4   : > { %1081 = vmatpush.xpose.msra.mxu0 %v1000_v37 }
 0x2e5   : > { %v897_v0 = vadd.f32 %v1467_v48, %v896_v62  ;;  %v1154_v62 = vsub.f32 1.0, %v1153_v61 }
 0x2e6   : > { %1136 = vmatpush.xpose.msra.mxu3 %v1043_v17  ;;  %v359_v17 = vld [vmem:[#allocation12 + $0x4] ss:$8 sm:$0x3] }
 0x2e7   : > { %v901_v6 = vsel %vm900_vm7, %v1467_v48, %v897_v0  ;;  %v1155_v63 = vmul.f32 %v1469_v60, %v1154_v62  ;;  %v1183_v10 = vperm.slane %v359_v17, 1 }
 0x2e8   : > { %v906_v7 = vsel %vm903_vm8, %v905_v3, %v901_v6  ;;  %1082 = vmatpush.xpose.msra.mxu0 %v998_v41 }
 0x2e9   : > { %v907_v8 = vmul.f32 %v1958_v15, %v906_v7  ;;  %v1009_v15 = vld [vmem:[#allocation11 + $0x58] sm:$0xff]  ;;  %v1156_v0 = vadd.f32 %v1469_v60, %v1155_v63 }
 0x2ea   : > { %1097 = vmatpush.xpose.msra.mxu1 %v1009_v15  ;;  %1137 = vmatpush.xpose.msra.mxu3 %v1041_v22  ;;  %v361_v15 = vld [vmem:[#allocation12 + $0x5] ss:$8 sm:$0x3]  ;;  %v1182_v22 = vperm.slane %v359_v17, 0 }
 0x2eb   : > { %1351 = vmatmul.msk.f32.vlgmr.msrb.gmra.mxu1 %vm883_vm0, %v907_v8  ;;  %v1158_v1 = vsel %vm1157_vm9, %v1469_v60, %v1156_v0  ;;  %v1189_v28 = vperm.slane %v361_v15, 0  ;;  %v1190_v29 = vperm.slane %v361_v15, 1 }
 0x2ee   : > { %1098 = vmatpush.xpose.msra.mxu1 %v1007_v24  ;;  %1138 = vmatpush.xpose.msra.mxu3 %v1039_v25 }
 0x2f2   : > { %1099 = vmatpush.xpose.msra.mxu1 %v1005_v30  ;;  %1139 = vmatpush.xpose.msra.mxu3 %v1037_v31 }
 0x2f6   : > { %1100 = vmatpush.xpose.msra.mxu1 %v1003_v20  ;;  %1140 = vmatpush.xpose.msra.mxu3 %v1035_v34 }
 0x2fa   : > { %1101 = vmatpush.xpose.msra.mxu1 %v1001_v36  ;;  %1141 = vmatpush.xpose.msra.mxu3 %v1033_v21 }
 0x2fe   : > { %1102 = vmatpush.xpose.msra.mxu1 %v999_v39  ;;  %1142 = vmatpush.xpose.msra.mxu3 %v1031_v40 }
 0x366   : > { %v995_v43 = vpop.f32.mrf.mxu3 }
 0x367   : > { %1103 = vmatmul.f32.vlgmr.msra.gmra.mxu1 %v995_v43  ;;  %1143 = vmatmul.f32.vlgmr.msra.gmra.mxu3 %v995_v43 }
 0x368   : > { %v928_v44 = vpop.f32.mrf.mxu1 }
 0x369   : > { %1083 = vmatmul.f32.vlgmr.msra.gmra.mxu0 %v928_v44  ;;  %1123 = vmatmul.f32.vlgmr.msra.gmra.mxu2 %v928_v44 }
 0x3e4   : > { %v1104_v50 = vpop.f32.mrf.mxu1 }
 0x3e6   : > { %v1084_v47 = vpop.f32.mrf.mxu0 }
 0x3e7   : > { %v1085_v48 = vadd.f32 %v1084_v47, %v1063_v46 }
 0x3e9   : > { %v1105_v52 = vadd.f32 %v1104_v50, %v1085_v48 }
 0x3ea   : > { %v1144_v54 = vpop.f32.mrf.mxu3 }
 0x3eb   : > { %v1147_v56 = vadd.f32 %v1105_v52, %v1917_v26 }
 0x3ec   : > { %v1124_v51 = vpop.f32.mrf.mxu2 }
 0x3ed   : > { %v1125_v53 = vadd.f32 %v1124_v51, %v1064_v49 }
 0x3ef   : > { %v1145_v55 = vadd.f32 %v1144_v54, %v1125_v53 }
 0x3f1   : > { %v1148_v57 = vadd.f32 %v1145_v55, %v1920_v27 }
 0x3f3   : > { %v1149_v58 = vadd.f32 %v1148_v57, %v1147_v56 }
 0x3f5   : > { %1150 = vadd.xlane.f32.xlu2 %v1149_v58 }
 0x468   : > { %v1151_v2 = vpop.xlane.xlu2 %1150 }
 0x469   : > { %v1159_v3 = vmul.f32 %v1158_v1, %v1151_v2 }
 0x46b   : > { %v1160_v4 = vsub.f32 %v1147_v56, %v1159_v3  ;;  %v1161_v5 = vsub.f32 %v1148_v57, %v1159_v3 }
 0x46d   : > { %v1162_v6 = vmul.f32 %v1160_v4, %v1160_v4  ;;  %v1163_v26 = vmul.f32 %v1161_v5, %v1161_v5 }
 0x46f   : > { %v1164_v7 = vadd.f32 %v1163_v26, %v1162_v6 }
 0x471   : > { %1165 = vadd.xlane.f32.xlu2 %v1164_v7 }
 0x4e4   : > { %v1166_v27 = vpop.xlane.xlu2 %1165 }
 0x4e5   : > { %v1167_v8 = vmul.f32 %v1166_v27, %v1158_v1 }
 0x4e7   : > { %v1168_v9 = vadd.f32 1e-12, %v1167_v8 }
 0x4e9   : > { %1470 = vrsqrt.f32 %v1168_v9  ;;  %vm1175_vm11 = vweird.f32 %v1168_v9 }
 0x4ef   : > { %v1471_v12 = vpop.eup %1470 }
 0x4f0   : > { %v1170_v13 = vmul.f32 %v1471_v12, %v1168_v9  ;;  %vm1176_vm10 = vweird.f32 %v1471_v12 }
 0x4f1   : > { %vm1177_vm12 = vmor %vm1175_vm11, %vm1176_vm10 }
 0x4f2   : > { %v1171_v14 = vmul.f32 %v1471_v12, %v1170_v13 }
 0x4f4   : > { %v1172_v16 = vmul.f32 0.5, %v1171_v14 }
 0x4f6   : > { %v1173_v18 = vsub.f32 1.5, %v1172_v16 }
 0x4f8   : > { %v1174_v19 = vmul.f32 %v1471_v12, %v1173_v18 }
 0x4fa   : > { %v1178_v23 = vsel %vm1177_vm12, %v1471_v12, %v1174_v19 }
 0x4fb   : > { %v1179_v24 = vmul.f32 %v1178_v23, %v1160_v4  ;;  %v1180_v25 = vmul.f32 %v1178_v23, %v1161_v5 }
 0x4fd   : > { %v1186_v30 = vmul.f32 %v1182_v22, %v1179_v24  ;;  %v1187_v31 = vmul.f32 %v1183_v10, %v1180_v25 }
 0x4ff   : > { %v1193_v32 = vadd.f32 %v1189_v28, %v1186_v30  ;;  %v1194_v33 = vadd.f32 %v1190_v29, %v1187_v31 }
 0x501   : > { %1195 = vst [vmem:[%s348_s28] sm:$0xff] %v1193_v32 }
 0x502   : > { %1196 = vst [vmem:[%s348_s28 + $0x8] sm:$0xff] %v1194_v33 }
 0x503   : > { %1679 = shalt.err (!%p1676_p9)
}
 0x504   : > { %1382 = dma.vmem_to_hbm [thread:$0]  (%p1861_p13), %s1212_s13, 256, %s1214_s14, %s1198_s19  }
 0x505 PF: > { %s1225_s20 = sand.u32 1, %s1718_s21   ;;  %p2016_p10 = scmp.ge.s32.totalorder %s1730_s24, 2 }
 0x506   : > { %s1226_s29 = scalar_lea.sflag [#allocation5], %s1225_s20 }
 0x507   : > { %p1405_p11 = pnand %p2016_p10, %p1866_p5 }
 0x509   : > { %p1406_p0 = pneg %p1405_p11 }
 0x50b   : > { %1713 = dma.done.wait (%p1406_p0), %s1226_s29, 256  }
 0x50c   : > { %1715 = vsyncadd (%p1406_p0), %s1226_s29, 4294967040  ;;  %p22_p2 = scmp.ge.s32.totalorder %s1841_s15, 4   ;;  %s2017_s21 = smov %s1722_s22 }
 0x50d   : > { %s2018_s22 = smov %s1726_s23  ;;  %s2019_s23 = smov %s1853_s17 }
 0x50e   : > { %s2020_s24 = smov %s1841_s15  ;;  %24 = sbr.rel (!%p22_p2) target bundleno = 8 (0x8), region = 114 }
 0x513   :  { %1232 = vsyncpa [#allocation4], 1 }
 0x514   :  { %1234 = vsyncpa [#allocation4 + $0x1], 1 }
 0x515   :  { %1235 = vsyncpa [#allocation7], 1 }
 0x516   :  { %1236 = vsyncpa [#allocation10], 1 }
 0x517   :  { %1237 = vsyncpa [#allocation13], 1 }
 0x518   :  { %1238 = vsyncpa [#allocation5], 1 }
 0x519   :  { %1240 = vsyncpa [#allocation5 + $0x1], 1 }

</bundles_post_ra>
